<compile_context>
chip_gen: v7x
topology: tpu7x:2x2x1
jax: 0.10.0
libtpu: 0.0.40
codegen_flags: <defaults>
</compile_context>

<pallas_src>
import functools
import math

import jax
import jax.numpy as jnp
from jax.experimental import pallas as pl
from jax.experimental.pallas import tpu as pltpu

BN_EPS = 1e-5


def _gelu(x, *, approximate):
    if approximate:
        return jax.nn.gelu(x, approximate=True)  # tanh -> EUP slot
    # nn.GELU() default == exact erf formulation.
    return 0.5 * x * (1.0 + jax.lax.erf(x * (1.0 / math.sqrt(2.0))))


def _scale_shift(s1, s2, gamma, beta, inv_b):
    """Training-mode BN (biased batch stats) folded to per-feature scale/shift.

    Single-pass variance (E[h^2] - mean^2) with a clamp; post-GELU activations
    are well-conditioned at these magnitudes (checked vs. two-pass reference).
    """
    mean = s1 * inv_b
    var = jnp.maximum(s2 * inv_b - mean * mean, 0.0)
    scale = gamma * jax.lax.rsqrt(var + BN_EPS)   # [F, 1]
    shift = beta - mean * scale                   # [F, 1]
    return scale, shift


def _critic_kernel(x_ref, w1_ref, w2_ref, p_ref, out_ref,
                   s1a_ref, s2a_ref, s1b_ref, s2b_ref,
                   *, hc, tile_b, batch, needs_mask, use_bf16,
                   approximate_gelu):
    sweep = pl.program_id(0)   # 0: BN1 stats, 1: BN2 stats, 2: emit output
    tile = pl.program_id(1)    # batch tile
    inv_b = 1.0 / batch
    mm_dtype = jnp.bfloat16 if use_bf16 else jnp.float32

    # Packed per-feature params: columns of a single [2Hc, 8] array.
    b1 = p_ref[:, 0:1]           # [2Hc, 1]
    g1 = p_ref[:, 1:2]
    be1 = p_ref[:, 2:3]
    b2 = p_ref[:hc, 3:4]         # [Hc, 1]
    g2 = p_ref[:hc, 4:5]
    be2 = p_ref[:hc, 5:6]
    w3 = p_ref[:hc, 6:7]         # final projection as a column
    b3 = p_ref[0:1, 7:8]         # [1, 1]

    # Mask for padded batch columns of the last tile (stats only).
    if needs_mask:
        lane = jax.lax.broadcasted_iota(jnp.int32, (1, tile_b), 1)
        valid = lane < (batch - tile * tile_b)
        stat_mask = lambda h: jnp.where(valid, h, 0.0)
    else:
        stat_mask = lambda h: h

    # Layer 1 (needed by every sweep): h1 = gelu(W1 @ x^T + b1), feature-major.
    x = x_ref[...]                                      # [TB, in_dim]
    h1 = jax.lax.dot_general(
        w1_ref[...].astype(mm_dtype), x.astype(mm_dtype),
        (((1,), (1,)), ((), ())),                       # contract in_dim (A @ B^T)
        preferred_element_type=jnp.float32) + b1        # [2Hc, TB]
    h1 = _gelu(h1, approximate=approximate_gelu)

    @pl.when(sweep < 2)
    def _():  # deterministic writeback for the not-yet-final output blocks
        out_ref[...] = jnp.zeros_like(out_ref)

    @pl.when(sweep == 0)
    def _():
        hm = stat_mask(h1)
        ps1 = jnp.sum(hm, axis=1, keepdims=True)        # lane reduce -> [2Hc,1]
        ps2 = jnp.sum(hm * hm, axis=1, keepdims=True)

        @pl.when(tile == 0)
        def _():
            s1a_ref[...] = ps1
            s2a_ref[...] = ps2

        @pl.when(tile > 0)
        def _():
            s1a_ref[...] += ps1
            s2a_ref[...] += ps2

    @pl.when(sweep > 0)
    def _():
        # BN1: scale applied to h1 (1 VPU op/elem); shift folded into layer-2
        # bias via a tiny matvec (no per-element cost).
        sc1, sh1 = _scale_shift(s1a_ref[...], s2a_ref[...], g1, be1, inv_b)
        b2_eff = b2 + jnp.dot(w2_ref[...], sh1,
                              preferred_element_type=jnp.float32)       # [Hc,1]
        h2 = jnp.dot(w2_ref[...].astype(mm_dtype),
                     (h1 * sc1).astype(mm_dtype),
                     preferred_element_type=jnp.float32) + b2_eff       # [Hc,TB]
        h2 = _gelu(h2, approximate=approximate_gelu)

        @pl.when(sweep == 1)
        def _():
            hm = stat_mask(h2)
            ps1 = jnp.sum(hm, axis=1, keepdims=True)
            ps2 = jnp.sum(hm * hm, axis=1, keepdims=True)

            @pl.when(tile == 0)
            def _():
                s1b_ref[...] = ps1
                s2b_ref[...] = ps2

            @pl.when(tile > 0)
            def _():
                s1b_ref[...] += ps1
                s2b_ref[...] += ps2

        @pl.when(sweep == 2)
        def _():
            # BN2 folded entirely into the final projection; the Hc->1 reduce
            # is a VPU broadcast-mul + sublane reduction (an N=1 MXU matmul
            # would waste the array), producing a lane-dense [1, TB] row.
            sc2, sh2 = _scale_shift(s1b_ref[...], s2b_ref[...], g2, be2, inv_b)
            w3_eff = w3 * sc2                                           # [Hc,1]
            b3_eff = b3 + jnp.sum(w3 * sh2, axis=0, keepdims=True)      # [1,1]
            out = jnp.sum(h2 * w3_eff, axis=0, keepdims=True) + b3_eff  # [1,TB]
            out_ref[...] = out.astype(out_ref.dtype)


def _pack_params(p, hc):
    """Pack the 8 small per-feature vectors into one [2Hc, 8] column array."""
    h2c = 2 * hc

    def col(v):
        v = jnp.asarray(v, jnp.float32).reshape(-1)
        return jnp.pad(v, (0, h2c - v.shape[0]))[:, None]

    return jnp.concatenate(
        [col(p["b1"]), col(p["g1"]), col(p["be1"]),
         col(p["b2"]), col(p["g2"]), col(p["be2"]),
         col(p["w3"]), col(p["b3"])], axis=1)


def critic_forward(states, params, *, tile_b=1024, use_bf16_matmul=False,
                   approximate_gelu=False):
    """states: [B, in_dim] f32 -> [B] f32 (== CriticModule.forward(...).flatten())."""
    B, in_dim = states.shape
    w1 = jnp.asarray(params["w1"], jnp.float32)   # [2Hc, in_dim] (PyTorch layout)
    w2 = jnp.asarray(params["w2"], jnp.float32)   # [Hc, 2Hc]
    h2c, hc = w1.shape[0], w2.shape[0]
    pvec = _pack_params(params, hc)

    if B <= tile_b:
        tb, b_pad = B, B                          # single tile, no padding
    else:
        assert tile_b % 128 == 0, "tile_b must be lane-dense (multiple of 128)"
        tb = tile_b
        b_pad = ((B + tb - 1) // tb) * tb
    x = states if b_pad == B else jnp.pad(states, ((0, b_pad - B), (0, 0)))
    n_tiles = b_pad // tb

    kernel = functools.partial(
        _critic_kernel, hc=hc, tile_b=tb, batch=B, needs_mask=(b_pad != B),
        use_bf16=use_bf16_matmul, approximate_gelu=approximate_gelu)

    out = pl.pallas_call(
        kernel,
        out_shape=jax.ShapeDtypeStruct((1, b_pad), jnp.float32),
        grid=(3, n_tiles),                               # (sweep, batch tile)
        in_specs=[
            pl.BlockSpec((tb, in_dim), lambda s, t: (t, 0)),    # x tiles (pipelined)
            pl.BlockSpec((h2c, in_dim), lambda s, t: (0, 0)),   # W1 (fetched once)
            pl.BlockSpec((hc, h2c), lambda s, t: (0, 0)),       # W2 (fetched once)
            pl.BlockSpec((h2c, 8), lambda s, t: (0, 0)),        # packed vectors
        ],
        out_specs=pl.BlockSpec((1, tb), lambda s, t: (0, t)),   # lane-dense output
        scratch_shapes=[
            pltpu.VMEM((h2c, 1), jnp.float32),   # BN1 sum
            pltpu.VMEM((h2c, 1), jnp.float32),   # BN1 sum of squares
            pltpu.VMEM((hc, 1), jnp.float32),    # BN2 sum
            pltpu.VMEM((hc, 1), jnp.float32),    # BN2 sum of squares
        ],
        compiler_params=pltpu.CompilerParams(
            # Both axes carry state (sweep order + cross-tile stats) -> arbitrary.
            # TODO(synk): v7x 2-TC split needs a cross-core stats combine.
            dimension_semantics=("arbitrary", "arbitrary"),
            # A few MiB at tile_b=1024; safe on v7x's 64 MiB physical VMEM.
            vmem_limit_bytes=32 * 1024 * 1024,
        ),
    )(x, w1, w2, pvec)
    return out[0, :B]


def init_params(key, in_dim, hidden_dim_critic):
    """Deterministic synthetic parameters, PyTorch shapes/init ([out, in] weights)."""
    hc = hidden_dim_critic
    h2c = 2 * hc
    ks = jax.random.split(key, 6)

    def lin(kw, kb, fan_in, fan_out):
        bound = 1.0 / math.sqrt(fan_in)
        w = jax.random.uniform(kw, (fan_out, fan_in), jnp.float32, -bound, bound)
        b = jax.random.uniform(kb, (fan_out,), jnp.float32, -bound, bound)
        return w, b

    w1, b1 = lin(ks[0], ks[1], in_dim, h2c)
    w2, b2 = lin(ks[2], ks[3], h2c, hc)
    w3, b3 = lin(ks[4], ks[5], hc, 1)
    return {
        "w1": w1, "b1": b1,
        "g1": jnp.ones((h2c,), jnp.float32), "be1": jnp.zeros((h2c,), jnp.float32),
        "w2": w2, "b2": b2,
        "g2": jnp.ones((hc,), jnp.float32), "be2": jnp.zeros((hc,), jnp.float32),
        "w3": w3, "b3": b3,
    }


def _bn_ref(x, gamma, beta):
    # Two-pass training-mode BN (PyTorch math) for cross-checking the kernel.
    mean = jnp.mean(x, axis=0, keepdims=True)
    var = jnp.mean((x - mean) * (x - mean), axis=0, keepdims=True)
    return (x - mean) * jax.lax.rsqrt(var + BN_EPS) * gamma + beta


def critic_reference(states, p):
    """Pure-JAX reference (exact erf GELU, f32) mirroring the PyTorch module."""
    h = states @ p["w1"].T + p["b1"]
    h = _bn_ref(_gelu(h, approximate=False), p["g1"], p["be1"])
    h = h @ p["w2"].T + p["b2"]
    h = _bn_ref(_gelu(h, approximate=False), p["g2"], p["be2"])
    return (h @ p["w3"].T + p["b3"]).reshape(-1)


if __name__ == "__main__":
    # hidden_dim_shared=16, num_players=2 -> in_dim=32; hidden_dim_critic=32.
    hidden_dim_shared, num_players, hidden_dim_critic = 16, 2, 32
    in_dim = hidden_dim_shared * num_players

    key = jax.random.PRNGKey(0)
    k_x, k_p, k_x2 = jax.random.split(key, 3)
    params = init_params(k_p, in_dim, hidden_dim_critic)

    # Small shape (single tile, no padding).
    batch = 8
    states = jax.random.normal(k_x, (batch, in_dim), jnp.float32)
    out = jax.block_until_ready(critic_forward(states, params))
    ref = critic_reference(states, params)
    assert out.shape == (batch,)
    assert jnp.allclose(out, ref, atol=1e-4, rtol=1e-4), \
        float(jnp.max(jnp.abs(out - ref)))

    # Exercise the gridded 3-sweep path (2 batch tiles + ragged/masked last tile).
    batch2 = 200
    states2 = jax.random.normal(k_x2, (batch2, in_dim), jnp.float32)
    out2 = jax.block_until_ready(critic_forward(states2, params, tile_b=128))
    ref2 = critic_reference(states2, params)
    assert out2.shape == (batch2,)
    assert jnp.allclose(out2, ref2, atol=5e-4, rtol=5e-4), \
        float(jnp.max(jnp.abs(out2 - ref2)))

    print("KERNEL_OK")
</pallas_src>

<mosaic_0001>
module attributes {stable_mosaic.version = 11 : i64} {
  func.func @_critic_kernel(%arg0: i32, %arg1: i32, %arg2: memref<8x32xf32, #tpu.memory_space<vmem>>, %arg3: memref<64x32xf32, #tpu.memory_space<vmem>>, %arg4: memref<32x64xf32, #tpu.memory_space<vmem>>, %arg5: memref<64x8xf32, #tpu.memory_space<vmem>>, %arg6: memref<1x8xf32, #tpu.memory_space<vmem>>, %arg7: memref<64x1xf32, #tpu.memory_space<vmem>>, %arg8: memref<64x1xf32, #tpu.memory_space<vmem>>, %arg9: memref<32x1xf32, #tpu.memory_space<vmem>>, %arg10: memref<32x1xf32, #tpu.memory_space<vmem>>) attributes {dimension_semantics = [#tpu.dimension_semantics<arbitrary>, #tpu.dimension_semantics<arbitrary>], iteration_bounds = array<i64: 3, 1>, scalar_prefetch = 0 : i64, scratch_operands = 4 : i64, tpu.core_type = #tpu.core_type<tc>, window_params = [{transform_indices = @transform_0, window_bounds = array<i64: 8, 32>}, {pipeline_mode = #tpu.pipeline_mode<synchronous>, transform_indices = @transform_1, window_bounds = array<i64: 64, 32>}, {pipeline_mode = #tpu.pipeline_mode<synchronous>, transform_indices = @transform_2, window_bounds = array<i64: 32, 64>}, {pipeline_mode = #tpu.pipeline_mode<synchronous>, transform_indices = @transform_3, window_bounds = array<i64: 64, 8>}, {transform_indices = @transform_4, window_bounds = array<i64: 1, 8>}]} {
    %c0 = arith.constant 0 : index
    %c0_0 = arith.constant 0 : index
    %0 = vector.load %arg5[%c0, %c0_0] : memref<64x8xf32, #tpu.memory_space<vmem>>, vector<64x1xf32>
    %c0_1 = arith.constant 0 : index
    %c1 = arith.constant 1 : index
    %1 = vector.load %arg5[%c0_1, %c1] : memref<64x8xf32, #tpu.memory_space<vmem>>, vector<64x1xf32>
    %c0_2 = arith.constant 0 : index
    %c2 = arith.constant 2 : index
    %2 = vector.load %arg5[%c0_2, %c2] : memref<64x8xf32, #tpu.memory_space<vmem>>, vector<64x1xf32>
    %c0_3 = arith.constant 0 : index
    %c3 = arith.constant 3 : index
    %3 = vector.load %arg5[%c0_3, %c3] : memref<64x8xf32, #tpu.memory_space<vmem>>, vector<32x1xf32>
    %c0_4 = arith.constant 0 : index
    %c4 = arith.constant 4 : index
    %4 = vector.load %arg5[%c0_4, %c4] : memref<64x8xf32, #tpu.memory_space<vmem>>, vector<32x1xf32>
    %c0_5 = arith.constant 0 : index
    %c5 = arith.constant 5 : index
    %5 = vector.load %arg5[%c0_5, %c5] : memref<64x8xf32, #tpu.memory_space<vmem>>, vector<32x1xf32>
    %c0_6 = arith.constant 0 : index
    %c6 = arith.constant 6 : index
    %6 = vector.load %arg5[%c0_6, %c6] : memref<64x8xf32, #tpu.memory_space<vmem>>, vector<32x1xf32>
    %c0_7 = arith.constant 0 : index
    %c7 = arith.constant 7 : index
    %7 = vector.load %arg5[%c0_7, %c7] : memref<64x8xf32, #tpu.memory_space<vmem>>, vector<1x1xf32>
    %c0_8 = arith.constant 0 : index
    %c0_9 = arith.constant 0 : index
    %8 = vector.load %arg2[%c0_8, %c0_9] : memref<8x32xf32, #tpu.memory_space<vmem>>, vector<8x32xf32>
    %c0_10 = arith.constant 0 : index
    %c0_11 = arith.constant 0 : index
    %9 = vector.load %arg3[%c0_10, %c0_11] : memref<64x32xf32, #tpu.memory_space<vmem>>, vector<64x32xf32>
    %cst = arith.constant dense<0.000000e+00> : vector<64x8xf32>
    %10 = tpu.matmul %9, %8, %cst {dimension_numbers = #tpu.dot_dimension_numbers<[1], [1], [0], [0], [0, 0, 1, 0], [], []>} : vector<64x32xf32>, vector<8x32xf32>, vector<64x8xf32> -> vector<64x8xf32>
    %11 = vector.broadcast %0 : vector<64x1xf32> to vector<64x8xf32>
    %12 = arith.addf %10, %11 : vector<64x8xf32>
    %cst_12 = arith.constant 5.000000e-01 : f32
    %13 = vector.broadcast %cst_12 : f32 to vector<64x8xf32>
    %14 = arith.mulf %13, %12 : vector<64x8xf32>
    %cst_13 = arith.constant 0.707106769 : f32
    %15 = vector.broadcast %cst_13 : f32 to vector<64x8xf32>
    %16 = arith.mulf %12, %15 : vector<64x8xf32>
    %17 = math.erf %16 : vector<64x8xf32>
    %cst_14 = arith.constant 1.000000e+00 : f32
    %18 = vector.broadcast %cst_14 : f32 to vector<64x8xf32>
    %19 = arith.addf %18, %17 : vector<64x8xf32>
    %20 = arith.mulf %14, %19 : vector<64x8xf32>
    %c2_i32 = arith.constant 2 : i32
    %21 = arith.cmpi slt, %arg0, %c2_i32 : i32
    %22 = arith.extui %21 : i1 to i32
    %c0_i32 = arith.constant 0 : i32
    %23 = arith.cmpi ne, %22, %c0_i32 : i32
    scf.if %23 {
      %cst_19 = arith.constant 0.000000e+00 : f32
      %30 = vector.broadcast %cst_19 : f32 to vector<1x8xf32>
      %c0_20 = arith.constant 0 : index
      %c0_21 = arith.constant 0 : index
      %31 = vector.load %arg6[%c0_20, %c0_21] : memref<1x8xf32, #tpu.memory_space<vmem>>, vector<1x8xf32>
      tpu.vector_store %arg6[%c0_20, %c0_21], %30 {strides = array<i32>} : memref<1x8xf32, #tpu.memory_space<vmem>>, vector<1x8xf32>,
    } else {
    }
    %c0_i32_15 = arith.constant 0 : i32
    %24 = arith.cmpi eq, %arg0, %c0_i32_15 : i32
    %25 = arith.extui %24 : i1 to i32
    %c0_i32_16 = arith.constant 0 : i32
    %26 = arith.cmpi ne, %25, %c0_i32_16 : i32
    scf.if %26 {
      %cst_19 = arith.constant dense<0.000000e+00> : vector<64xf32>
      %30 = vector.multi_reduction <add>, %20, %cst_19 [1] : vector<64x8xf32> to vector<64xf32>
      %31 = vector.shape_cast %30 : vector<64xf32> to vector<64x1xf32>
      %32 = arith.mulf %20, %20 : vector<64x8xf32>
      %cst_20 = arith.constant dense<0.000000e+00> : vector<64xf32>
      %33 = vector.multi_reduction <add>, %32, %cst_20 [1] : vector<64x8xf32> to vector<64xf32>
      %34 = vector.shape_cast %33 : vector<64xf32> to vector<64x1xf32>
      %c0_i32_21 = arith.constant 0 : i32
      %35 = arith.cmpi eq, %arg1, %c0_i32_21 : i32
      %36 = arith.extui %35 : i1 to i32
      %c0_i32_22 = arith.constant 0 : i32
      %37 = arith.cmpi ne, %36, %c0_i32_22 : i32
      scf.if %37 {
        %c0_25 = arith.constant 0 : index
        %c0_26 = arith.constant 0 : index
        %41 = vector.load %arg7[%c0_25, %c0_26] : memref<64x1xf32, #tpu.memory_space<vmem>>, vector<64x1xf32>
        tpu.vector_store %arg7[%c0_25, %c0_26], %31 {strides = array<i32>} : memref<64x1xf32, #tpu.memory_space<vmem>>, vector<64x1xf32>,
        %c0_27 = arith.constant 0 : index
        %c0_28 = arith.constant 0 : index
        %42 = vector.load %arg8[%c0_27, %c0_28] : memref<64x1xf32, #tpu.memory_space<vmem>>, vector<64x1xf32>
        tpu.vector_store %arg8[%c0_27, %c0_28], %34 {strides = array<i32>} : memref<64x1xf32, #tpu.memory_space<vmem>>, vector<64x1xf32>,
      } else {
      }
      %c0_i32_23 = arith.constant 0 : i32
      %38 = arith.cmpi sgt, %arg1, %c0_i32_23 : i32
      %39 = arith.extui %38 : i1 to i32
      %c0_i32_24 = arith.constant 0 : i32
      %40 = arith.cmpi ne, %39, %c0_i32_24 : i32
      scf.if %40 {
        %c0_25 = arith.constant 0 : index
        %c0_26 = arith.constant 0 : index
        %41 = vector.load %arg7[%c0_25, %c0_26] : memref<64x1xf32, #tpu.memory_space<vmem>>, vector<64x1xf32>
        %42 = arith.addf %41, %31 : vector<64x1xf32>
        %c0_27 = arith.constant 0 : index
        %c0_28 = arith.constant 0 : index
        %43 = vector.load %arg7[%c0_27, %c0_28] : memref<64x1xf32, #tpu.memory_space<vmem>>, vector<64x1xf32>
        tpu.vector_store %arg7[%c0_27, %c0_28], %42 {strides = array<i32>} : memref<64x1xf32, #tpu.memory_space<vmem>>, vector<64x1xf32>,
        %c0_29 = arith.constant 0 : index
        %c0_30 = arith.constant 0 : index
        %44 = vector.load %arg8[%c0_29, %c0_30] : memref<64x1xf32, #tpu.memory_space<vmem>>, vector<64x1xf32>
        %45 = arith.addf %44, %34 : vector<64x1xf32>
        %c0_31 = arith.constant 0 : index
        %c0_32 = arith.constant 0 : index
        %46 = vector.load %arg8[%c0_31, %c0_32] : memref<64x1xf32, #tpu.memory_space<vmem>>, vector<64x1xf32>
        tpu.vector_store %arg8[%c0_31, %c0_32], %45 {strides = array<i32>} : memref<64x1xf32, #tpu.memory_space<vmem>>, vector<64x1xf32>,
      } else {
      }
    } else {
    }
    %c0_i32_17 = arith.constant 0 : i32
    %27 = arith.cmpi sgt, %arg0, %c0_i32_17 : i32
    %28 = arith.extui %27 : i1 to i32
    %c0_i32_18 = arith.constant 0 : i32
    %29 = arith.cmpi ne, %28, %c0_i32_18 : i32
    scf.if %29 {
      %c0_19 = arith.constant 0 : index
      %c0_20 = arith.constant 0 : index
      %30 = vector.load %arg7[%c0_19, %c0_20] : memref<64x1xf32, #tpu.memory_space<vmem>>, vector<64x1xf32>
      %c0_21 = arith.constant 0 : index
      %c0_22 = arith.constant 0 : index
      %31 = vector.load %arg8[%c0_21, %c0_22] : memref<64x1xf32, #tpu.memory_space<vmem>>, vector<64x1xf32>
      %cst_23 = arith.constant 1.250000e-01 : f32
      %32 = vector.broadcast %cst_23 : f32 to vector<64x1xf32>
      %33 = arith.mulf %30, %32 : vector<64x1xf32>
      %cst_24 = arith.constant 1.250000e-01 : f32
      %34 = vector.broadcast %cst_24 : f32 to vector<64x1xf32>
      %35 = arith.mulf %31, %34 : vector<64x1xf32>
      %36 = arith.mulf %33, %33 : vector<64x1xf32>
      %37 = arith.subf %35, %36 : vector<64x1xf32>
      %cst_25 = arith.constant 0.000000e+00 : f32
      %38 = vector.broadcast %cst_25 : f32 to vector<64x1xf32>
      %39 = arith.maximumf %37, %38 : vector<64x1xf32>
      %cst_26 = arith.constant 9.99999974E-6 : f32
      %40 = vector.broadcast %cst_26 : f32 to vector<64x1xf32>
      %41 = arith.addf %39, %40 : vector<64x1xf32>
      %42 = math.rsqrt %41 : vector<64x1xf32>
      %43 = arith.mulf %1, %42 : vector<64x1xf32>
      %44 = arith.mulf %33, %43 : vector<64x1xf32>
      %45 = arith.subf %2, %44 : vector<64x1xf32>
      %c0_27 = arith.constant 0 : index
      %c0_28 = arith.constant 0 : index
      %46 = vector.load %arg4[%c0_27, %c0_28] : memref<32x64xf32, #tpu.memory_space<vmem>>, vector<32x64xf32>
      %cst_29 = arith.constant dense<0.000000e+00> : vector<32x1xf32>
      %47 = tpu.matmul %46, %45, %cst_29 {dimension_numbers = #tpu.dot_dimension_numbers<[1], [0], [0], [1], [0, 0, 1, 1], [], []>} : vector<32x64xf32>, vector<64x1xf32>, vector<32x1xf32> -> vector<32x1xf32>
      %48 = arith.addf %3, %47 : vector<32x1xf32>
      %c0_30 = arith.constant 0 : index
      %c0_31 = arith.constant 0 : index
      %49 = vector.load %arg4[%c0_30, %c0_31] : memref<32x64xf32, #tpu.memory_space<vmem>>, vector<32x64xf32>
      %50 = vector.broadcast %43 : vector<64x1xf32> to vector<64x8xf32>
      %51 = arith.mulf %20, %50 : vector<64x8xf32>
      %cst_32 = arith.constant dense<0.000000e+00> : vector<32x8xf32>
      %52 = tpu.matmul %49, %51, %cst_32 {dimension_numbers = #tpu.dot_dimension_numbers<[1], [0], [0], [1], [0, 0, 1, 1], [], []>} : vector<32x64xf32>, vector<64x8xf32>, vector<32x8xf32> -> vector<32x8xf32>
      %53 = vector.broadcast %48 : vector<32x1xf32> to vector<32x8xf32>
      %54 = arith.addf %52, %53 : vector<32x8xf32>
      %cst_33 = arith.constant 5.000000e-01 : f32
      %55 = vector.broadcast %cst_33 : f32 to vector<32x8xf32>
      %56 = arith.mulf %55, %54 : vector<32x8xf32>
      %cst_34 = arith.constant 0.707106769 : f32
      %57 = vector.broadcast %cst_34 : f32 to vector<32x8xf32>
      %58 = arith.mulf %54, %57 : vector<32x8xf32>
      %59 = math.erf %58 : vector<32x8xf32>
      %cst_35 = arith.constant 1.000000e+00 : f32
      %60 = vector.broadcast %cst_35 : f32 to vector<32x8xf32>
      %61 = arith.addf %60, %59 : vector<32x8xf32>
      %62 = arith.mulf %56, %61 : vector<32x8xf32>
      %c1_i32 = arith.constant 1 : i32
      %63 = arith.cmpi eq, %arg0, %c1_i32 : i32
      %64 = arith.extui %63 : i1 to i32
      %c0_i32_36 = arith.constant 0 : i32
      %65 = arith.cmpi ne, %64, %c0_i32_36 : i32
      scf.if %65 {
        %cst_39 = arith.constant dense<0.000000e+00> : vector<32xf32>
        %69 = vector.multi_reduction <add>, %62, %cst_39 [1] : vector<32x8xf32> to vector<32xf32>
        %70 = vector.shape_cast %69 : vector<32xf32> to vector<32x1xf32>
        %71 = arith.mulf %62, %62 : vector<32x8xf32>
        %cst_40 = arith.constant dense<0.000000e+00> : vector<32xf32>
        %72 = vector.multi_reduction <add>, %71, %cst_40 [1] : vector<32x8xf32> to vector<32xf32>
        %73 = vector.shape_cast %72 : vector<32xf32> to vector<32x1xf32>
        %c0_i32_41 = arith.constant 0 : i32
        %74 = arith.cmpi eq, %arg1, %c0_i32_41 : i32
        %75 = arith.extui %74 : i1 to i32
        %c0_i32_42 = arith.constant 0 : i32
        %76 = arith.cmpi ne, %75, %c0_i32_42 : i32
        scf.if %76 {
          %c0_45 = arith.constant 0 : index
          %c0_46 = arith.constant 0 : index
          %80 = vector.load %arg9[%c0_45, %c0_46] : memref<32x1xf32, #tpu.memory_space<vmem>>, vector<32x1xf32>
          tpu.vector_store %arg9[%c0_45, %c0_46], %70 {strides = array<i32>} : memref<32x1xf32, #tpu.memory_space<vmem>>, vector<32x1xf32>,
          %c0_47 = arith.constant 0 : index
          %c0_48 = arith.constant 0 : index
          %81 = vector.load %arg10[%c0_47, %c0_48] : memref<32x1xf32, #tpu.memory_space<vmem>>, vector<32x1xf32>
          tpu.vector_store %arg10[%c0_47, %c0_48], %73 {strides = array<i32>} : memref<32x1xf32, #tpu.memory_space<vmem>>, vector<32x1xf32>,
        } else {
        }
        %c0_i32_43 = arith.constant 0 : i32
        %77 = arith.cmpi sgt, %arg1, %c0_i32_43 : i32
        %78 = arith.extui %77 : i1 to i32
        %c0_i32_44 = arith.constant 0 : i32
        %79 = arith.cmpi ne, %78, %c0_i32_44 : i32
        scf.if %79 {
          %c0_45 = arith.constant 0 : index
          %c0_46 = arith.constant 0 : index
          %80 = vector.load %arg9[%c0_45, %c0_46] : memref<32x1xf32, #tpu.memory_space<vmem>>, vector<32x1xf32>
          %81 = arith.addf %80, %70 : vector<32x1xf32>
          %c0_47 = arith.constant 0 : index
          %c0_48 = arith.constant 0 : index
          %82 = vector.load %arg9[%c0_47, %c0_48] : memref<32x1xf32, #tpu.memory_space<vmem>>, vector<32x1xf32>
          tpu.vector_store %arg9[%c0_47, %c0_48], %81 {strides = array<i32>} : memref<32x1xf32, #tpu.memory_space<vmem>>, vector<32x1xf32>,
          %c0_49 = arith.constant 0 : index
          %c0_50 = arith.constant 0 : index
          %83 = vector.load %arg10[%c0_49, %c0_50] : memref<32x1xf32, #tpu.memory_space<vmem>>, vector<32x1xf32>
          %84 = arith.addf %83, %73 : vector<32x1xf32>
          %c0_51 = arith.constant 0 : index
          %c0_52 = arith.constant 0 : index
          %85 = vector.load %arg10[%c0_51, %c0_52] : memref<32x1xf32, #tpu.memory_space<vmem>>, vector<32x1xf32>
          tpu.vector_store %arg10[%c0_51, %c0_52], %84 {strides = array<i32>} : memref<32x1xf32, #tpu.memory_space<vmem>>, vector<32x1xf32>,
        } else {
        }
      } else {
      }
      %c2_i32_37 = arith.constant 2 : i32
      %66 = arith.cmpi eq, %arg0, %c2_i32_37 : i32
      %67 = arith.extui %66 : i1 to i32
      %c0_i32_38 = arith.constant 0 : i32
      %68 = arith.cmpi ne, %67, %c0_i32_38 : i32
      scf.if %68 {
        %c0_39 = arith.constant 0 : index
        %c0_40 = arith.constant 0 : index
        %69 = vector.load %arg9[%c0_39, %c0_40] : memref<32x1xf32, #tpu.memory_space<vmem>>, vector<32x1xf32>
        %c0_41 = arith.constant 0 : index
        %c0_42 = arith.constant 0 : index
        %70 = vector.load %arg10[%c0_41, %c0_42] : memref<32x1xf32, #tpu.memory_space<vmem>>, vector<32x1xf32>
        %cst_43 = arith.constant 1.250000e-01 : f32
        %71 = vector.broadcast %cst_43 : f32 to vector<32x1xf32>
        %72 = arith.mulf %69, %71 : vector<32x1xf32>
        %cst_44 = arith.constant 1.250000e-01 : f32
        %73 = vector.broadcast %cst_44 : f32 to vector<32x1xf32>
        %74 = arith.mulf %70, %73 : vector<32x1xf32>
        %75 = arith.mulf %72, %72 : vector<32x1xf32>
        %76 = arith.subf %74, %75 : vector<32x1xf32>
        %cst_45 = arith.constant 0.000000e+00 : f32
        %77 = vector.broadcast %cst_45 : f32 to vector<32x1xf32>
        %78 = arith.maximumf %76, %77 : vector<32x1xf32>
        %cst_46 = arith.constant 9.99999974E-6 : f32
        %79 = vector.broadcast %cst_46 : f32 to vector<32x1xf32>
        %80 = arith.addf %78, %79 : vector<32x1xf32>
        %81 = math.rsqrt %80 : vector<32x1xf32>
        %82 = arith.mulf %4, %81 : vector<32x1xf32>
        %83 = arith.mulf %72, %82 : vector<32x1xf32>
        %84 = arith.subf %5, %83 : vector<32x1xf32>
        %85 = arith.mulf %6, %82 : vector<32x1xf32>
        %86 = arith.mulf %6, %84 : vector<32x1xf32>
        %cst_47 = arith.constant dense<0.000000e+00> : vector<1xf32>
        %87 = vector.multi_reduction <add>, %86, %cst_47 [0] : vector<32x1xf32> to vector<1xf32>
        %88 = vector.shape_cast %87 : vector<1xf32> to vector<1x1xf32>
        %89 = arith.addf %7, %88 : vector<1x1xf32>
        %90 = vector.broadcast %85 : vector<32x1xf32> to vector<32x8xf32>
        %91 = arith.mulf %62, %90 : vector<32x8xf32>
        %cst_48 = arith.constant dense<0.000000e+00> : vector<8xf32>
        %92 = vector.multi_reduction <add>, %91, %cst_48 [0] : vector<32x8xf32> to vector<8xf32>
        %93 = vector.shape_cast %92 : vector<8xf32> to vector<1x8xf32>
        %94 = vector.broadcast %89 : vector<1x1xf32> to vector<1x8xf32>
        %95 = arith.addf %93, %94 : vector<1x8xf32>
        %c0_49 = arith.constant 0 : index
        %c0_50 = arith.constant 0 : index
        %96 = vector.load %arg6[%c0_49, %c0_50] : memref<1x8xf32, #tpu.memory_space<vmem>>, vector<1x8xf32>
        tpu.vector_store %arg6[%c0_49, %c0_50], %95 {strides = array<i32>} : memref<1x8xf32, #tpu.memory_space<vmem>>, vector<1x8xf32>,
      } else {
      }
    } else {
    }
    return
  }
  func.func @transform_0(%arg0: i32, %arg1: i32) -> (i32, i32) {
    %c0_i32 = arith.constant 0 : i32
    %c0_i32_0 = arith.constant 0 : i32
    return %arg1, %c0_i32 : i32, i32
  }
  func.func @transform_1(%arg0: i32, %arg1: i32) -> (i32, i32) {
    %c0_i32 = arith.constant 0 : i32
    %c0_i32_0 = arith.constant 0 : i32
    %c0_i32_1 = arith.constant 0 : i32
    return %c0_i32, %c0_i32_0 : i32, i32
  }
  func.func @transform_2(%arg0: i32, %arg1: i32) -> (i32, i32) {
    %c0_i32 = arith.constant 0 : i32
    %c0_i32_0 = arith.constant 0 : i32
    %c0_i32_1 = arith.constant 0 : i32
    return %c0_i32, %c0_i32_0 : i32, i32
  }
  func.func @transform_3(%arg0: i32, %arg1: i32) -> (i32, i32) {
    %c0_i32 = arith.constant 0 : i32
    %c0_i32_0 = arith.constant 0 : i32
    %c0_i32_1 = arith.constant 0 : i32
    return %c0_i32, %c0_i32_0 : i32, i32
  }
  func.func @transform_4(%arg0: i32, %arg1: i32) -> (i32, i32) {
    %c0_i32 = arith.constant 0 : i32
    %c0_i32_0 = arith.constant 0 : i32
    return %c0_i32, %arg1 : i32, i32
  }
}

</mosaic_0001>

<bundles_post_ra>
// kernel: tpu_custom_call.1
= control target key start
LH: loop header
LB: loop body
LE: loop exit
PB: predicated region body
PF: predicated region fallthrough
CT: control target
= control target key end

     0   :  { %9 = vsyncpa [#allocation7], 0  ;;  %s1798_s15 = smov 0   ;;  %s1800_s16 = smov 0   ;;  %s2207_s0 = inlined_call_operand.vmem [shape: f32[8,32], index: 0, kind: input, shape index: {}]   ;;  %s2208_s1 = inlined_call_operand.vmem [shape: f32[64,32], index: 1, kind: input, shape index: {}]   ;;  %s2209_s2 = inlined_call_operand.vmem [shape: f32[32,64], index: 2, kind: input, shape index: {}]   ;;  %s2210_s3 = inlined_call_operand.vmem [shape: f32[64,8], index: 3, kind: input, shape index: {}]   ;;  %s2211_s4 = inlined_call_operand.hbm [shape: f32[1,8], index: 4, kind: output, shape index: {}]  }
   0x1   :  { %s1802_s17 = smov 0  }
   0x2 LB: > { %s1423_s18 = sadd.s32 4294967295, %s1754_s17   ;;  %s27_s19 = sadd.s32 1, %s1750_s16  ;;  %s1754_s17 = sphi %s1802_s17, %s15_s17   ;;  %s1750_s16 = sphi %s1800_s16, %s2214_s16   ;;  %s1746_s15 = sphi %s1798_s15, %s2213_s15  }
   0x3   : > { %p29_p0 = scmp.ge.s32.totalorder %s27_s19, 3  ;;  %p1426_p1 = scmp.ge.s32.totalorder %s1754_s17, 1 }
   0x4   : > { %p174_p2 = scmp.lt.s32.totalorder %s1754_s17, 4 }
   0x5   : > { %s2216_s19 = smov (%p29_p0, %s27_s19), 0 }
   0x6   : > { %p175_p3 = pnand %p1426_p1, %p174_p2 }
   0x7   : > { %v1822_v0 = vld [vmem:[%s2210_s3] sm:$0x1] (!%p175_p3)  ;;  %vm256_vm0 = vcmask (!%p175_p3), 261120   ;;  %v209_v4 = vld [vmem:[%s2208_s1 + $0x8] sm:$0xff] (!%p175_p3)  ;;  %v210_v6 = vld [vmem:[%s2208_s1 + $0x10] sm:$0xff] (!%p175_p3)  ;;  %v1756_v8 = vmov (!%p175_p3), 0  }
   0x8   : > { %178 = sbr.rel (%p175_p3) target bundleno = 2363 (0x93b), region = 36  ;;  %v207_v1 = vld [vmem:[%s2207_s0] sm:$0xff] (!%p175_p3)  ;;  %v213_v5 = vld [vmem:[%s2208_s1 + $0x28] sm:$0xff] (!%p175_p3)  ;;  %v214_v7 = vld [vmem:[%s2208_s1 + $0x30] sm:$0xff] (!%p175_p3)  ;;  %1626 = vset.pattern.permute.xlu1 (!%p175_p3), %v1756_v8  ;;  %1625 = vset.pattern.permute.xlu0 (!%p175_p3), %v1756_v8  ;;  %p1436_p4 = scmp.ge.s32.totalorder (!%p175_p3), %s1746_s15, 2 }
   0x9   : > { %v208_v2 = vld [vmem:[%s2208_s1] sm:$0xff] (!%p175_p3)  ;;  %1486 = vmatprep.subr.msk.mxu0 (!%p175_p3), %vm256_vm0, %v207_v1  ;;  %1576 = vmatprep.subr.msk.mxu1 (!%p175_p3), %vm256_vm0, %v207_v1  ;;  %v1854_v9 = vld [vmem:[%s2210_s3 + $0x10] sm:$0xff] (!%p175_p3)  ;;  %v211_v11 = vld [vmem:[%s2208_s1 + $0x18] sm:$0xff] (!%p175_p3) }
   0xa   : > { %v212_v3 = vld [vmem:[%s2208_s1 + $0x20] sm:$0xff] (!%p175_p3)  ;;  %1487 = vmatpush3.xpose.msk.msra.mxu0 (!%p175_p3), %vm256_vm0, %v207_v1  ;;  %1577 = vmatpush3.xpose.msk.msra.mxu1 (!%p175_p3), %vm256_vm0, %v207_v1  ;;  %v215_v12 = vld [vmem:[%s2208_s1 + $0x38] sm:$0xff] (!%p175_p3)  ;;  %v1881_v14 = vld [vmem:[%s2210_s3 + $0x8] sm:$0xff] (!%p175_p3) }
   0xb   : > { %1488 = vmatprep.mubr.msk.f32.mxu0 (!%p175_p3), %vm256_vm0, %v208_v2  ;;  %1494 = vmatprep.mubr.msk.f32.mxu1 (!%p175_p3), %vm256_vm0, %v212_v3  ;;  %v1859_v10 = vld [vmem:[%s2210_s3] sm:$0xff] (!%p175_p3)  ;;  %v1876_v13 = vld [vmem:[%s2210_s3 + $0x18] sm:$0xff] (!%p175_p3)  ;;  %v1890_v15 = vld [vmem:[%s2210_s3 + $0x28] sm:$0xff] (!%p175_p3) }
   0xc   : > { %228 = vperm.xlu1 (!%p175_p3), %1626, %v1854_v9   ;;  %218 = vperm.xlu0 (!%p175_p3), %1625, %v1859_v10   ;;  %v1895_v16 = vld [vmem:[%s2210_s3 + $0x20] sm:$0xff] (!%p175_p3)  ;;  %v1902_v17 = vld [vmem:[%s2210_s3 + $0x38] sm:$0xff] (!%p175_p3)  ;;  %v1907_v18 = vld [vmem:[%s2210_s3 + $0x30] sm:$0xff] (!%p175_p3) }
   0xd   : > { %1489 = vmatmul.mubr.msk.f32.vlgmr.msra.gmra.mrb[0].mxu0 (!%p175_p3), %vm256_vm0, %v209_v4  ;;  %1495 = vmatmul.mubr.msk.f32.vlgmr.msra.gmra.mrb[0].mxu1 (!%p175_p3), %vm256_vm0, %v213_v5 }
   0xe   : > { %1491 = vmatprep.mubr.msk.f32.mxu0 (!%p175_p3), %vm256_vm0, %v210_v6  ;;  %1497 = vmatprep.mubr.msk.f32.mxu1 (!%p175_p3), %vm256_vm0, %v214_v7 }
   0xf   : > { %vm433_vm1 = vcmask (!%p1436_p4), 57344  }
  0x10   : > { %233 = vperm.xlu1 %1626, %v1876_v13   ;;  %223 = vperm.xlu0 %1625, %v1881_v14  }
  0x11   : > { %1492 = vmatmul.mubr.msk.f32.gmra.mrb[2].mxu0 %vm256_vm0, %v211_v11  ;;  %1498 = vmatmul.mubr.msk.f32.gmra.mrb[2].mxu1 %vm256_vm0, %v215_v12 }
  0x14   : > { %243 = vperm.xlu1 %1626, %v1890_v15   ;;  %238 = vperm.xlu0 %1625, %v1895_v16  }
  0x18   : > { %253 = vperm.xlu1 %1626, %v1902_v17   ;;  %248 = vperm.xlu0 %1625, %v1907_v18  }
  0x8b   : > { %v229_v19 = vpop.permute.xlu1 %228  ;;  %v219_v20 = vpop.permute.xlu0 %218 }
  0x8f   : > { %v234_v21 = vpop.permute.xlu1 %233  ;;  %v224_v22 = vpop.permute.xlu0 %223 }
  0x93   : > { %v244_v23 = vpop.permute.xlu1 %243  ;;  %v239_v24 = vpop.permute.xlu0 %238 }
  0x97   : > { %v254_v35 = vpop.permute.xlu1 %253  ;;  %v249_v36 = vpop.permute.xlu0 %248 }
  0xe0   : > { %v1490_v25 = vpop.f32.mrb[0].mxu0  ;;  %v1496_v26 = vpop.f32.mrb[0].mxu1 }
  0xe1   : > { %v356_v27 = vadd.f32 %v1490_v25, %v224_v22  ;;  %v376_v28 = vadd.f32 %v1496_v26, %v244_v23  ;;  %v350_v29 = vpop.f32.mrb[1].mxu0  ;;  %v370_v30 = vpop.f32.mrb[1].mxu1 }
  0xe2   : > { %v351_v31 = vadd.f32 %v350_v29, %v219_v20  ;;  %v371_v32 = vadd.f32 %v370_v30, %v239_v24 }
  0xe3   : > { %v398_v33 = vmul.f32 0.70710677, %v356_v27  ;;  %v402_v34 = vmul.f32 0.70710677, %v376_v28  ;;  %v390_v53 = vmul.f32 0.5, %v356_v27  ;;  %v394_v56 = vmul.f32 0.5, %v376_v28 }
  0xe4   : > { %v397_v37 = vmul.f32 0.70710677, %v351_v31  ;;  %v401_v38 = vmul.f32 0.70710677, %v371_v32  ;;  %v1493_v39 = vpop.f32.mrb[2].mxu0  ;;  %v1499_v40 = vpop.f32.mrb[2].mxu1 }
  0xe5   : > { %1627 = verf.f32 %v398_v33  ;;  %v366_v41 = vadd.f32 %v1493_v39, %v234_v21  ;;  %v386_v42 = vadd.f32 %v1499_v40, %v254_v35  ;;  %v360_v43 = vpop.f32.mrb[3].mxu0  ;;  %v380_v44 = vpop.f32.mrb[3].mxu1  ;;  %v389_v60 = vmul.f32 0.5, %v351_v31 }
  0xe6   : > { %1629 = verf.f32 %v402_v34  ;;  %v361_v45 = vadd.f32 %v360_v43, %v229_v19  ;;  %v381_v46 = vadd.f32 %v380_v44, %v249_v36  ;;  %v393_v63 = vmul.f32 0.5, %v371_v32 }
  0xe7   : > { %1631 = verf.f32 %v397_v37  ;;  %v400_v47 = vmul.f32 0.70710677, %v366_v41  ;;  %v404_v48 = vmul.f32 0.70710677, %v386_v42  ;;  %v392_v6 = vmul.f32 0.5, %v366_v41 }
  0xe8   : > { %1633 = verf.f32 %v401_v38  ;;  %v399_v49 = vmul.f32 0.70710677, %v361_v45  ;;  %v403_v50 = vmul.f32 0.70710677, %v381_v46  ;;  %v396_v11 = vmul.f32 0.5, %v386_v42 }
  0xe9   : > { %1635 = verf.f32 %v400_v47  ;;  %v391_v21 = vmul.f32 0.5, %v361_v45  ;;  %v395_v24 = vmul.f32 0.5, %v381_v46  ;;  %v1757_v28 = vmov (!%p1436_p4), 0.0  }
  0xea   : > { %1637 = verf.f32 %v404_v48  ;;  %434 = vst.msk [vmem:[#allocation6] sm:$0x1] (!%p1436_p4), %vm433_vm1, %v1757_v28 }
  0xeb   : > { %1639 = verf.f32 %v399_v49 }
  0xec   : > { %1641 = verf.f32 %v403_v50 }
  0xef   : > { %v1628_v51 = vpop.eup %1627 }
  0xf0   : > { %v1630_v52 = vpop.eup %1629  ;;  %v414_v54 = vadd.f32 1.0, %v1628_v51 }
  0xf1   : > { %v1632_v55 = vpop.eup %1631  ;;  %v418_v57 = vadd.f32 1.0, %v1630_v52 }
  0xf2   : > { %v1634_v58 = vpop.eup %1633  ;;  %v1911_v59 = vmul.f32 %v414_v54, %v390_v53  ;;  %v413_v61 = vadd.f32 1.0, %v1632_v55 }
  0xf3   : > { %v1913_v62 = vmul.f32 %v418_v57, %v394_v56  ;;  %v417_v1 = vadd.f32 1.0, %v1634_v58  ;;  %v1636_v2 = vpop.eup %1635  ;;  %432 = sbr.rel (%p1436_p4) target bundleno = 250 (0xfa), region = 40 }
  0xf4   : > { %v1915_v3 = vmul.f32 %v413_v61, %v389_v60  ;;  %v1638_v4 = vpop.eup %1637  ;;  %v416_v7 = vadd.f32 1.0, %v1636_v2 }
  0xf5   : > { %v1917_v5 = vmul.f32 %v417_v1, %v393_v63  ;;  %v1640_v8 = vpop.eup %1639  ;;  %v420_v12 = vadd.f32 1.0, %v1638_v4 }
  0xf6   : > { %v1642_v19 = vpop.eup %1641  ;;  %v1919_v20 = vmul.f32 %v416_v7, %v392_v6  ;;  %v415_v22 = vadd.f32 1.0, %v1640_v8 }
  0xf7   : > { %v1921_v23 = vmul.f32 %v420_v12, %v396_v11  ;;  %v419_v25 = vadd.f32 1.0, %v1642_v19 }
  0xf8   : > { %v1923_v26 = vmul.f32 %v415_v22, %v391_v21 }
  0xf9   : > { %v1925_v27 = vmul.f32 %v419_v25, %v395_v24 }
  0xfa PF: > { %p1437_p5 = scmp.ne.s32.totalorder %s1746_s15, 0 }
  0xfb   : > { %vm439_vm2 = vcmask (!%p1437_p5), 64512   ;;  %v465_v37 = vmul.f32 (!%p1437_p5), %v1911_v59, %v1911_v59  ;;  %v464_v38 = vmul.f32 (!%p1437_p5), %v1915_v3, %v1915_v3  ;;  %v467_v41 = vmul.f32 (!%p1437_p5), %v1919_v20, %v1919_v20 }
  0xfc   : > { %438 = sbr.rel (%p1437_p5) target bundleno = 424 (0x1a8), region = 44  ;;  %v446_v29 = vsel (!%p1437_p5), %vm439_vm2, %v1923_v26, 0.0  ;;  %v440_v30 = vsel (!%p1437_p5), %vm439_vm2, %v1915_v3, 0.0  ;;  %v449_v31 = vsel (!%p1437_p5), %vm439_vm2, %v1919_v20, 0.0  ;;  %v443_v32 = vsel (!%p1437_p5), %vm439_vm2, %v1911_v59, 0.0 }
  0xfd   : > { %447 = vadd.xlane.f32.xlu1 (!%p1437_p5), %v446_v29  ;;  %441 = vadd.xlane.f32.xlu0 (!%p1437_p5), %v440_v30  ;;  %v455_v33 = vsel (!%p1437_p5), %vm439_vm2, %v1913_v62, 0.0  ;;  %v452_v34 = vsel (!%p1437_p5), %vm439_vm2, %v1917_v5, 0.0  ;;  %v461_v35 = vsel (!%p1437_p5), %vm439_vm2, %v1921_v23, 0.0  ;;  %v458_v36 = vsel (!%p1437_p5), %vm439_vm2, %v1925_v27, 0.0 }
  0xfe   : > { %v475_v39 = vsel (!%p1437_p5), %vm439_vm2, %v465_v37, 0.0  ;;  %v472_v40 = vsel (!%p1437_p5), %vm439_vm2, %v464_v38, 0.0  ;;  %v466_v42 = vmul.f32 (!%p1437_p5), %v1923_v26, %v1923_v26  ;;  %v481_v43 = vsel (!%p1437_p5), %vm439_vm2, %v467_v41, 0.0 }
  0xff   : > { %v469_v45 = vmul.f32 (!%p1437_p5), %v1913_v62, %v1913_v62  ;;  %v468_v46 = vmul.f32 (!%p1437_p5), %v1917_v5, %v1917_v5  ;;  %v471_v49 = vmul.f32 (!%p1437_p5), %v1921_v23, %v1921_v23  ;;  %v470_v50 = vmul.f32 (!%p1437_p5), %v1925_v27, %v1925_v27 }
 0x100   : > { %v478_v44 = vsel (!%p1437_p5), %vm439_vm2, %v466_v42, 0.0  ;;  %vm500_vm3 = vcmask (!%p1437_p5), 7168  }
 0x101   : > { %450 = vadd.xlane.f32.xlu1 (!%p1437_p5), %v449_v31  ;;  %444 = vadd.xlane.f32.xlu0 (!%p1437_p5), %v443_v32  ;;  %v487_v47 = vsel (!%p1437_p5), %vm439_vm2, %v469_v45, 0.0  ;;  %v484_v48 = vsel (!%p1437_p5), %vm439_vm2, %v468_v46, 0.0  ;;  %v493_v51 = vsel (!%p1437_p5), %vm439_vm2, %v471_v49, 0.0  ;;  %v490_v52 = vsel (!%p1437_p5), %vm439_vm2, %v470_v50, 0.0 }
 0x105   : > { %456 = vadd.xlane.f32.xlu1 %v455_v33  ;;  %453 = vadd.xlane.f32.xlu0 %v452_v34 }
 0x109   : > { %462 = vadd.xlane.f32.xlu1 %v461_v35  ;;  %459 = vadd.xlane.f32.xlu0 %v458_v36 }
 0x10d   : > { %476 = vadd.xlane.f32.xlu1 %v475_v39  ;;  %473 = vadd.xlane.f32.xlu0 %v472_v40 }
 0x111   : > { %482 = vadd.xlane.f32.xlu1 %v481_v43  ;;  %479 = vadd.xlane.f32.xlu0 %v478_v44 }
 0x115   : > { %488 = vadd.xlane.f32.xlu1 %v487_v47  ;;  %485 = vadd.xlane.f32.xlu0 %v484_v48 }
 0x119   : > { %494 = vadd.xlane.f32.xlu1 %v493_v51  ;;  %491 = vadd.xlane.f32.xlu0 %v490_v52 }
 0x18a   : > { %v448_v53 = vpop.xlane.xlu1 %447  ;;  %v442_v54 = vpop.xlane.xlu0 %441 }
 0x18b   : > { %503 = vst.msk [vmem:[#allocation2 + $0x10] sm:$0xff] %vm500_vm3, %v448_v53  ;;  %501 = vst.msk [vmem:[#allocation2] sm:$0xff] %vm500_vm3, %v442_v54 }
 0x18e   : > { %v451_v55 = vpop.xlane.xlu1 %450  ;;  %v445_v56 = vpop.xlane.xlu0 %444 }
 0x18f   : > { %504 = vst.msk [vmem:[#allocation2 + $0x18] sm:$0xff] %vm500_vm3, %v451_v55  ;;  %502 = vst.msk [vmem:[#allocation2 + $0x8] sm:$0xff] %vm500_vm3, %v445_v56 }
 0x192   : > { %v457_v57 = vpop.xlane.xlu1 %456  ;;  %v454_v58 = vpop.xlane.xlu0 %453 }
 0x193   : > { %506 = vst.msk [vmem:[#allocation2 + $0x28] sm:$0xff] %vm500_vm3, %v457_v57  ;;  %505 = vst.msk [vmem:[#allocation2 + $0x20] sm:$0xff] %vm500_vm3, %v454_v58 }
 0x196   : > { %v463_v60 = vpop.xlane.xlu1 %462  ;;  %v460_v61 = vpop.xlane.xlu0 %459 }
 0x197   : > { %508 = vst.msk [vmem:[#allocation2 + $0x38] sm:$0xff] %vm500_vm3, %v463_v60  ;;  %507 = vst.msk [vmem:[#allocation2 + $0x30] sm:$0xff] %vm500_vm3, %v460_v61 }
 0x19a   : > { %v477_v63 = vpop.xlane.xlu1 %476  ;;  %v474_v1 = vpop.xlane.xlu0 %473 }
 0x19b   : > { %510 = vst.msk [vmem:[#allocation3 + $0x8] sm:$0xff] %vm500_vm3, %v477_v63  ;;  %509 = vst.msk [vmem:[#allocation3] sm:$0xff] %vm500_vm3, %v474_v1 }
 0x19e   : > { %v483_v2 = vpop.xlane.xlu1 %482  ;;  %v480_v4 = vpop.xlane.xlu0 %479 }
 0x19f   : > { %512 = vst.msk [vmem:[#allocation3 + $0x18] sm:$0xff] %vm500_vm3, %v483_v2  ;;  %511 = vst.msk [vmem:[#allocation3 + $0x10] sm:$0xff] %vm500_vm3, %v480_v4 }
 0x1a2   : > { %v489_v6 = vpop.xlane.xlu1 %488  ;;  %v486_v7 = vpop.xlane.xlu0 %485 }
 0x1a3   : > { %514 = vst.msk [vmem:[#allocation3 + $0x28] sm:$0xff] %vm500_vm3, %v489_v6  ;;  %513 = vst.msk [vmem:[#allocation3 + $0x20] sm:$0xff] %vm500_vm3, %v486_v7 }
 0x1a6   : > { %v495_v8 = vpop.xlane.xlu1 %494  ;;  %v492_v11 = vpop.xlane.xlu0 %491 }
 0x1a7   : > { %516 = vst.msk [vmem:[#allocation3 + $0x38] sm:$0xff] %vm500_vm3, %v495_v8  ;;  %515 = vst.msk [vmem:[#allocation3 + $0x30] sm:$0xff] %vm500_vm3, %v492_v11 }
 0x1a8 PF: > { %p1438_p6 = scmp.le.s32.totalorder %s1746_s15, 0 }
 0x1a9   : > { %v574_v12 = vld [vmem:[#allocation2] sm:$0xff] (!%p1438_p6)  ;;  %v576_v21 = vld [vmem:[#allocation2 + $0x10] sm:$0xff] (!%p1438_p6)  ;;  %v575_v29 = vld [vmem:[#allocation2 + $0x8] sm:$0xff] (!%p1438_p6)  ;;  %s1758_s9 = smov (!%p1438_p6), 1   ;;  %s1759_s10 = smov (!%p1438_p6), 127   ;;  %vm802_vm4 = vcmask (!%p1438_p6), 523264  }
 0x1aa   : > { %573 = sbr.rel (%p1438_p6) target bundleno = 2338 (0x922), region = 56  ;;  %v582_v19 = vld [vmem:[#allocation3] sm:$0xff] (!%p1438_p6)  ;;  %v1986_v22 = vmul.f32 (!%p1438_p6), 0.125, %v574_v12  ;;  %v584_v25 = vld [vmem:[#allocation3 + $0x10] sm:$0xff] (!%p1438_p6)  ;;  %v1988_v28 = vmul.f32 (!%p1438_p6), 0.125, %v576_v21  ;;  %v583_v30 = vld [vmem:[#allocation3 + $0x8] sm:$0xff] (!%p1438_p6) }
 0x1ab   : > { %v598_v24 = vmul.f32 (!%p1438_p6), 0.125, %v582_v19  ;;  %v600_v31 = vmul.f32 (!%p1438_p6), 0.125, %v584_v25  ;;  %v1990_v32 = vmul.f32 (!%p1438_p6), 0.125, %v575_v29  ;;  %v599_v33 = vmul.f32 (!%p1438_p6), 0.125, %v583_v30  ;;  %v577_v34 = vld [vmem:[#allocation2 + $0x18] sm:$0xff] (!%p1438_p6)  ;;  %v579_v36 = vld [vmem:[#allocation2 + $0x28] sm:$0xff] (!%p1438_p6) }
 0x1ac   : > { %v585_v35 = vld [vmem:[#allocation3 + $0x18] sm:$0xff] (!%p1438_p6)  ;;  %v606_v37 = vmul.f32 (!%p1438_p6), %v1986_v22, %v1986_v22  ;;  %v608_v38 = vmul.f32 (!%p1438_p6), %v1988_v28, %v1988_v28  ;;  %v1996_v39 = vmul.f32 (!%p1438_p6), 0.125, %v577_v34  ;;  %v587_v41 = vld [vmem:[#allocation3 + $0x28] sm:$0xff] (!%p1438_p6)  ;;  %v578_v42 = vld [vmem:[#allocation2 + $0x20] sm:$0xff] (!%p1438_p6)  ;;  %v2000_v45 = vmul.f32 (!%p1438_p6), 0.125, %v579_v36  ;;  %s1760_s11 = smov (!%p1438_p6), 2  }
 0x1ad   : > { %v601_v40 = vmul.f32 (!%p1438_p6), 0.125, %v585_v35  ;;  %v586_v43 = vld [vmem:[#allocation3 + $0x20] sm:$0xff] (!%p1438_p6)  ;;  %v607_v44 = vmul.f32 (!%p1438_p6), %v1990_v32, %v1990_v32  ;;  %v603_v46 = vmul.f32 (!%p1438_p6), 0.125, %v587_v41  ;;  %v2002_v47 = vmul.f32 (!%p1438_p6), 0.125, %v578_v42  ;;  %v581_v48 = vld [vmem:[#allocation2 + $0x38] sm:$0xff] (!%p1438_p6)  ;;  %v580_v58 = vld [vmem:[#allocation2 + $0x30] sm:$0xff] (!%p1438_p6) }
 0x1ae   : > { %v589_v49 = vld [vmem:[#allocation3 + $0x38] sm:$0xff] (!%p1438_p6)  ;;  %v614_v50 = vsub.f32 (!%p1438_p6), %v598_v24, %v606_v37  ;;  %v616_v51 = vsub.f32 (!%p1438_p6), %v600_v31, %v608_v38  ;;  %v609_v52 = vmul.f32 (!%p1438_p6), %v1996_v39, %v1996_v39  ;;  %v602_v53 = vmul.f32 (!%p1438_p6), 0.125, %v586_v43  ;;  %v588_v8 = vld [vmem:[#allocation3 + $0x30] sm:$0xff] (!%p1438_p6)  ;;  %s1762_s12 = smov (!%p1438_p6), 126   ;;  %s1764_s26 = smov (!%p1438_p6), 3  }
 0x1af   : > { %v615_v54 = vsub.f32 (!%p1438_p6), %v599_v33, %v607_v44  ;;  %v611_v55 = vmul.f32 (!%p1438_p6), %v2000_v45, %v2000_v45  ;;  %v610_v56 = vmul.f32 (!%p1438_p6), %v2002_v47, %v2002_v47  ;;  %v2010_v57 = vmul.f32 (!%p1438_p6), 0.125, %v581_v48  ;;  %p1447_p7 = scmp.ne.s32.totalorder (!%p1438_p6), %s1746_s15, 1 }
 0x1b0   : > { %v622_v60 = vmax.f32 (!%p1438_p6), %v614_v50, 0.0  ;;  %v624_v61 = vmax.f32 (!%p1438_p6), %v616_v51, 0.0  ;;  %v617_v63 = vsub.f32 (!%p1438_p6), %v601_v40, %v609_v52  ;;  %v605_v1 = vmul.f32 (!%p1438_p6), 0.125, %v589_v49 }
 0x1b1   : > { %v623_v2 = vmax.f32 %v615_v54, 0.0  ;;  %v619_v4 = vsub.f32 %v603_v46, %v611_v55  ;;  %v618_v6 = vsub.f32 %v602_v53, %v610_v56  ;;  %v613_v7 = vmul.f32 %v2010_v57, %v2010_v57 }
 0x1b2   : > { %v630_v11 = vadd.f32 1e-05, %v622_v60  ;;  %v632_v12 = vadd.f32 1e-05, %v624_v61  ;;  %v625_v19 = vmax.f32 %v617_v63, 0.0  ;;  %v2014_v21 = vmul.f32 0.125, %v580_v58 }
 0x1b3   : > { %v631_v24 = vadd.f32 1e-05, %v623_v2  ;;  %v627_v25 = vmax.f32 %v619_v4, 0.0  ;;  %v626_v29 = vmax.f32 %v618_v6, 0.0  ;;  %v621_v30 = vsub.f32 %v605_v1, %v613_v7 }
 0x1b4   : > { %1667 = vrsqrt.f32 %v630_v11  ;;  %v633_v31 = vadd.f32 1e-05, %v625_v19  ;;  %v604_v33 = vmul.f32 0.125, %v588_v8  ;;  %v612_v34 = vmul.f32 %v2014_v21, %v2014_v21 }
 0x1b5   : > { %1669 = vrsqrt.f32 %v632_v12  ;;  %v634_v35 = vadd.f32 1e-05, %v626_v29  ;;  %v635_v37 = vadd.f32 1e-05, %v627_v25  ;;  %v629_v38 = vmax.f32 %v621_v30, 0.0 }
 0x1b6   : > { %1671 = vrsqrt.f32 %v631_v24  ;;  %v620_v36 = vsub.f32 %v604_v33, %v612_v34  ;;  %vm1089_vm5 = vcmask (!%p1447_p7), 64512   ;;  %vm1122_vm6 = vcmask (!%p1447_p7), 7168  }
 0x1b7   : > { %1673 = vrsqrt.f32 %v633_v31  ;;  %v637_v42 = vadd.f32 1e-05, %v629_v38 }
 0x1b8   : > { %v628_v40 = vmax.f32 %v620_v36, 0.0  ;;  %1675 = vrsqrt.f32 %v634_v35 }
 0x1b9   : > { %1677 = vrsqrt.f32 %v635_v37  ;;  %v1761_v37 = vmov 1  }
 0x1ba   : > { %v636_v41 = vadd.f32 1e-05, %v628_v40  ;;  %1663 = vset.pattern.permute.xlu0 %v1761_v37  ;;  %1664 = vset.pattern.permute.xlu1 %v1761_v37 }
 0x1bc   : > { %1679 = vrsqrt.f32 %v636_v41 }
 0x1bd   : > { %1681 = vrsqrt.f32 %v637_v42 }
 0x1be   : > { %v1668_v43 = vpop.eup %1667 }
 0x1bf   : > { %v1670_v44 = vpop.eup %1669  ;;  %654 = vrot.lane.b32.xlu0 %v1668_v43, %s1758_s9 }
 0x1c0   : > { %v1672_v46 = vpop.eup %1671  ;;  %658 = vrot.lane.b32.xlu1 %v1670_v44, %s1758_s9 }
 0x1c1   : > { %v1674_v48 = vpop.eup %1673 }
 0x1c2   : > { %v1676_v49 = vpop.eup %1675 }
 0x1c3   : > { %656 = vrot.lane.b32.xlu0 %v1672_v46, %s1758_s9  ;;  %v1678_v50 = vpop.eup %1677 }
 0x1c4   : > { %660 = vrot.lane.b32.xlu1 %v1674_v48, %s1758_s9 }
 0x1c6   : > { %v1680_v51 = vpop.eup %1679 }
 0x1c7   : > { %662 = vrot.lane.b32.xlu0 %v1676_v49, %s1758_s9  ;;  %v1682_v52 = vpop.eup %1681 }
 0x1c8   : > { %664 = vrot.lane.b32.xlu1 %v1678_v50, %s1758_s9 }
 0x1cb   : > { %666 = vrot.lane.b32.xlu0 %v1680_v51, %s1758_s9 }
 0x1cc   : > { %668 = vrot.lane.b32.xlu1 %v1682_v52, %s1758_s9 }
 0x231   : > { %v655_v53 = vpop.permute.xlu0 %654 }
 0x232   : > { %v2019_v54 = vmul.f32 %v655_v53, %v1859_v10  ;;  %v659_v55 = vpop.permute.xlu1 %658 }
 0x233   : > { %v2023_v56 = vmul.f32 %v659_v55, %v1854_v9  ;;  %v766_v55 = vld [vmem:[%s2209_s2] sm:$0xff] }
 0x234   : > { %694 = vrot.lane.b32.xlu0 %v2019_v54, %s1759_s10  ;;  %1516 = vmatprep.mubr.msk.f32.mxu0 %vm802_vm4, %v766_v55 }
 0x235   : > { %v657_v58 = vpop.permute.xlu0 %656  ;;  %1538 = vmatprep.mubr.msk.f32.mxu1 %vm802_vm4, %v766_v55 }
 0x236   : > { %v2026_v60 = vmul.f32 %v657_v58, %v1881_v14  ;;  %v661_v61 = vpop.permute.xlu1 %660 }
 0x237   : > { %v2031_v63 = vmul.f32 %v661_v61, %v1876_v13 }
 0x238   : > { %698 = vrot.lane.b32.xlu0 %v2023_v56, %s1759_s10  ;;  %696 = vrot.lane.b32.xlu1 %v2026_v60, %s1759_s10 }
 0x239   : > { %v663_v1 = vpop.permute.xlu0 %662 }
 0x23a   : > { %v665_v2 = vpop.permute.xlu1 %664  ;;  %v2034_v4 = vmul.f32 %v663_v1, %v1895_v16 }
 0x23b   : > { %v2038_v6 = vmul.f32 %v665_v2, %v1890_v15 }
 0x23c   : > { %700 = vrot.lane.b32.xlu1 %v2031_v63, %s1759_s10  ;;  %702 = vrot.lane.b32.xlu0 %v2034_v4, %s1759_s10 }
 0x23d   : > { %v667_v7 = vpop.permute.xlu0 %666 }
 0x23e   : > { %v669_v8 = vpop.permute.xlu1 %668  ;;  %v2042_v11 = vmul.f32 %v667_v7, %v1907_v18 }
 0x23f   : > { %v2046_v12 = vmul.f32 %v669_v8, %v1902_v17 }
 0x240   : > { %704 = vrot.lane.b32.xlu1 %v2038_v6, %s1759_s10  ;;  %706 = vrot.lane.b32.xlu0 %v2042_v11, %s1759_s10 }
 0x244   : > { %708 = vrot.lane.b32.xlu1 %v2046_v12, %s1759_s10 }
 0x2a6   : > { %v695_v19 = vpop.permute.xlu0 %694 }
 0x2a7   : > { %v718_v24 = vmul.f32 %v695_v19, %v1986_v22 }
 0x2a9   : > { %734 = vrot.lane.b32.xlu0 %v718_v24, %s1760_s11 }
 0x2aa   : > { %v697_v25 = vpop.permute.xlu1 %696  ;;  %v699_v29 = vpop.permute.xlu0 %698 }
 0x2ab   : > { %v719_v30 = vmul.f32 %v697_v25, %v1990_v32  ;;  %v720_v31 = vmul.f32 %v699_v29, %v1988_v28  ;;  %v767_v29 = vld [vmem:[%s2209_s2 + $0x8] sm:$0xff] }
 0x2ad   : > { %736 = vrot.lane.b32.xlu1 %v719_v30, %s1760_s11  ;;  %738 = vrot.lane.b32.xlu0 %v720_v31, %s1760_s11  ;;  %v768_v30 = vld [vmem:[%s2209_s2 + $0x10] sm:$0xff]  ;;  %v769_v31 = vld [vmem:[%s2209_s2 + $0x18] sm:$0xff] }
 0x2ae   : > { %v701_v33 = vpop.permute.xlu1 %700  ;;  %v703_v34 = vpop.permute.xlu0 %702 }
 0x2af   : > { %v721_v35 = vmul.f32 %v701_v33, %v1996_v39  ;;  %v722_v36 = vmul.f32 %v703_v34, %v2002_v47 }
 0x2b1   : > { %740 = vrot.lane.b32.xlu1 %v721_v35, %s1760_s11  ;;  %742 = vrot.lane.b32.xlu0 %v722_v36, %s1760_s11 }
 0x2b2   : > { %v705_v22 = vpop.permute.xlu1 %704  ;;  %v707_v38 = vpop.permute.xlu0 %706 }
 0x2b3   : > { %v723_v40 = vmul.f32 %v705_v22, %v2000_v45  ;;  %v724_v32 = vmul.f32 %v707_v38, %v2014_v21 }
 0x2b5   : > { %744 = vrot.lane.b32.xlu1 %v723_v40, %s1760_s11  ;;  %746 = vrot.lane.b32.xlu0 %v724_v32, %s1760_s11 }
 0x2b6   : > { %v709_v28 = vpop.permute.xlu1 %708 }
 0x2b7   : > { %v725_v41 = vmul.f32 %v709_v28, %v2010_v57 }
 0x2b9   : > { %748 = vrot.lane.b32.xlu1 %v725_v41, %s1760_s11 }
 0x31b   : > { %v735_v39 = vpop.permute.xlu0 %734 }
 0x31c   : > { %v758_v43 = vsub.f32 %v1859_v10, %v735_v39 }
 0x31f   : > { %v737_v42 = vpop.permute.xlu1 %736  ;;  %v739_v47 = vpop.permute.xlu0 %738 }
 0x320   : > { %v759_v44 = vsub.f32 %v1881_v14, %v737_v42  ;;  %v760_v45 = vsub.f32 %v1854_v9, %v739_v47 }
 0x322   : > { %v1643_v46 = vpack.i.bf16 %v759_v44, %v758_v43 }
 0x323   : > { %v741_v48 = vpop.permute.xlu1 %740  ;;  %v743_v49 = vpop.permute.xlu0 %742 }
 0x324   : > { %v761_v21 = vsub.f32 %v1876_v13, %v741_v48  ;;  %1644 = vrot.lane.b32.xlu0 %v1643_v46, %s1762_s12  ;;  %v762_v57 = vsub.f32 %v1895_v16, %v743_v49 }
 0x326   : > { %v1648_v50 = vpack.i.bf16 %v761_v21, %v760_v45 }
 0x327   : > { %v745_v51 = vpop.permute.xlu1 %744  ;;  %v747_v52 = vpop.permute.xlu0 %746 }
 0x328   : > { %v763_v53 = vsub.f32 %v1890_v15, %v745_v51  ;;  %1649 = vrot.lane.b32.xlu1 %v1648_v50, %s1762_s12  ;;  %v764_v61 = vsub.f32 %v1907_v18, %v747_v52 }
 0x32a   : > { %v1653_v58 = vpack.i.bf16 %v763_v53, %v762_v57 }
 0x32b   : > { %v749_v1 = vpop.permute.xlu1 %748 }
 0x32c   : > { %v765_v16 = vsub.f32 %v1902_v17, %v749_v1  ;;  %1654 = vrot.lane.b32.xlu0 %v1653_v58, %s1762_s12 }
 0x32e   : > { %v1658_v2 = vpack.i.bf16 %v765_v16, %v764_v61 }
 0x330   : > { %921 = vperm.xlu0 %1663, %v2019_v54   ;;  %1659 = vrot.lane.b32.xlu1 %v1658_v2, %s1762_s12 }
 0x334   : > { %933 = vperm.xlu0 %1663, %v2031_v63   ;;  %925 = vperm.xlu1 %1664, %v2026_v60  }
 0x338   : > { %941 = vperm.xlu0 %1663, %v2038_v6   ;;  %929 = vperm.xlu1 %1664, %v2023_v56  }
 0x33c   : > { %949 = vperm.xlu0 %1663, %v2046_v12   ;;  %937 = vperm.xlu1 %1664, %v2034_v4  }
 0x340   : > { %945 = vperm.xlu1 %1664, %v2042_v11  }
 0x396   : > { %v1645_v15 = vpop.permute.xlu0 %1644 }
 0x397   : > { %v1647_v17 = vunpack.i.h.bf16 %v1645_v15  ;;  %v1646_v18 = vunpack.i.l.bf16 %v1645_v15 }
 0x399   : > { %v1544_v7 = vpack.c.bf16 %v1647_v17, %v1646_v18 }
 0x39a   : > { %v1650_v54 = vpop.permute.xlu1 %1649 }
 0x39b   : > { %v1652_v8 = vunpack.i.h.bf16 %v1650_v54  ;;  %v1651_v19 = vunpack.i.l.bf16 %v1650_v54  ;;  %1545 = vmatprep.subr.bf16.mxu0 %v1544_v7 }
 0x39c   : > { %1547 = vmatpush3.bf16.msra.mxu0 %v1544_v7 }
 0x39d   : > { %v1548_v60 = vpack.c.bf16 %v1652_v8, %v1651_v19 }
 0x39e   : > { %v1655_v63 = vpop.permute.xlu0 %1654 }
 0x39f   : > { %v1657_v6 = vunpack.i.h.bf16 %v1655_v63  ;;  %v1656_v24 = vunpack.i.l.bf16 %v1655_v63  ;;  %1549 = vmatprep.subr.bf16.mxu0 %v1548_v60 }
 0x3a0   : > { %1551 = vmatpush3.bf16.msra.mxu0 %v1548_v60 }
 0x3a1   : > { %v1552_v56 = vpack.c.bf16 %v1657_v6, %v1656_v24 }
 0x3a2   : > { %v1660_v12 = vpop.permute.xlu1 %1659 }
 0x3a3   : > { %v1662_v4 = vunpack.i.h.bf16 %v1660_v12  ;;  %v1661_v25 = vunpack.i.l.bf16 %v1660_v12  ;;  %1553 = vmatprep.subr.bf16.mxu0 %v1552_v56 }
 0x3a4   : > { %1555 = vmatpush3.bf16.msra.mxu0 %v1552_v56 }
 0x3a5   : > { %v1556_v11 = vpack.c.bf16 %v1662_v4, %v1661_v25 }
 0x3a7   : > { %1557 = vmatprep.subr.bf16.mxu0 %v1556_v11 }
 0x3a8   : > { %1559 = vmatpush3.bf16.msra.mxu0 %v1556_v11 }
 0x3ab   : > { %1517 = vmatmul.mubr.msk.f32.vlgmr.msra.gmra.mrb[0].mxu0 %vm802_vm4, %v767_v29 }
 0x3ac   : > { %1519 = vmatprep.mubr.msk.f32.mxu0 %vm802_vm4, %v768_v30 }
 0x3af   : > { %v922_v33 = vpop.permute.xlu0 %921  ;;  %1520 = vmatmul.mubr.msk.f32.gmra.mrb[2].mxu0 %vm802_vm4, %v769_v31 }
 0x3b0   : > { %v952_v36 = vmul.f32 %v922_v33, %v1915_v3 }
 0x3b3   : > { %v926_v34 = vpop.permute.xlu1 %925  ;;  %v934_v35 = vpop.permute.xlu0 %933 }
 0x3b4   : > { %v953_v37 = vmul.f32 %v926_v34, %v1911_v59  ;;  %v955_v32 = vmul.f32 %v934_v35, %v1919_v20 }
 0x3b6   : > { %v1560_v22 = vpack.c.bf16 %v953_v37, %v952_v36 }
 0x3b7   : > { %v930_v38 = vpop.permute.xlu1 %929  ;;  %v942_v40 = vpop.permute.xlu0 %941 }
 0x3b8   : > { %v954_v28 = vmul.f32 %v930_v38, %v1923_v26  ;;  %1561 = vmatprep.subr.bf16.mxu1 %v1560_v22  ;;  %v957_v42 = vmul.f32 %v942_v40, %v1913_v62  ;;  %v1763_v62 = vmov 3  }
 0x3b9   : > { %1563 = vmatpush3.bf16.msra.mxu1 %v1560_v22  ;;  %1666 = vset.pattern.permute.xlu0 %v1763_v62 }
 0x3ba   : > { %v1564_v41 = vpack.c.bf16 %v955_v32, %v954_v28  ;;  %1665 = vset.pattern.permute.xlu1 %v1763_v62 }
 0x3bb   : > { %v938_v39 = vpop.permute.xlu1 %937  ;;  %v950_v43 = vpop.permute.xlu0 %949 }
 0x3bc   : > { %v956_v47 = vmul.f32 %v938_v39, %v1917_v5  ;;  %1565 = vmatprep.subr.bf16.mxu1 %v1564_v41  ;;  %v959_v44 = vmul.f32 %v950_v43, %v1921_v23 }
 0x3bd   : > { %1567 = vmatpush3.bf16.msra.mxu1 %v1564_v41 }
 0x3be   : > { %v1568_v3 = vpack.c.bf16 %v957_v42, %v956_v47 }
 0x3bf   : > { %v946_v59 = vpop.permute.xlu1 %945 }
 0x3c0   : > { %v958_v46 = vmul.f32 %v946_v59, %v1925_v27  ;;  %1569 = vmatprep.subr.bf16.mxu1 %v1568_v3 }
 0x3c1   : > { %1571 = vmatpush3.bf16.msra.mxu1 %v1568_v3 }
 0x3c2   : > { %v1572_v20 = vpack.c.bf16 %v959_v44, %v958_v46 }
 0x3c4   : > { %1573 = vmatprep.subr.bf16.mxu1 %v1572_v20 }
 0x3c5   : > { %1575 = vmatpush3.bf16.msra.mxu1 %v1572_v20 }
 0x3c8   : > { %1539 = vmatmul.mubr.msk.f32.vlgmr.msra.gmra.mrb[0].mxu1 %vm802_vm4, %v767_v29 }
 0x3c9   : > { %1541 = vmatprep.mubr.msk.f32.mxu1 %vm802_vm4, %v768_v30 }
 0x3cc   : > { %1542 = vmatmul.mubr.msk.f32.gmra.mrb[2].mxu1 %vm802_vm4, %v769_v31 }
 0x47e   : > { %v1518_v5 = vpop.f32.mrb[0].mxu0 }
 0x47f   : > { %906 = vrot.lane.b32.xlu0 %v1518_v5, %s1764_s26  ;;  %v881_v23 = vpop.f32.mrb[1].mxu0 }
 0x480   : > { %904 = vrot.lane.b32.xlu1 %v881_v23, %s1764_s26 }
 0x482   : > { %v1521_v26 = vpop.f32.mrb[2].mxu0 }
 0x483   : > { %910 = vrot.lane.b32.xlu0 %v1521_v26, %s1764_s26  ;;  %v891_v27 = vpop.f32.mrb[3].mxu0 }
 0x484   : > { %908 = vrot.lane.b32.xlu1 %v891_v27, %s1764_s26 }
 0x49b   : > { %v1540_v48 = vpop.f32.mrb[0].mxu1 }
 0x49c   : > { %v1046_v57 = vpop.f32.mrb[1].mxu1 }
 0x49f   : > { %v1543_v53 = vpop.f32.mrb[2].mxu1 }
 0x4a0   : > { %v1056_v58 = vpop.f32.mrb[3].mxu1 }
 0x4f1   : > { %v907_v49 = vpop.permute.xlu0 %906 }
 0x4f2   : > { %v917_v45 = vadd.f32 %v907_v49, %v1881_v14  ;;  %v905_v21 = vpop.permute.xlu1 %904 }
 0x4f3   : > { %v916_v50 = vadd.f32 %v905_v21, %v1859_v10 }
 0x4f4   : > { %967 = vperm.xlu0 %1666, %v917_v45  }
 0x4f5   : > { %962 = vperm.xlu1 %1665, %v916_v50   ;;  %v911_v55 = vpop.permute.xlu0 %910 }
 0x4f6   : > { %v909_v51 = vpop.permute.xlu1 %908  ;;  %v919_v61 = vadd.f32 %v911_v55, %v1876_v13 }
 0x4f7   : > { %v918_v52 = vadd.f32 %v909_v51, %v1854_v9 }
 0x4f9   : > { %972 = vperm.xlu1 %1665, %v918_v52  }
 0x4fd   : > { %977 = vperm.xlu1 %1665, %v919_v61  }
 0x573   : > { %v968_v1 = vpop.permute.xlu0 %967 }
 0x574   : > { %v1052_v16 = vadd.f32 %v1540_v48, %v968_v1  ;;  %v963_v2 = vpop.permute.xlu1 %962 }
 0x575   : > { %v1047_v15 = vadd.f32 %v1046_v57, %v963_v2 }
 0x576   : > { %v1070_v17 = vmul.f32 0.70710677, %v1052_v16  ;;  %v1066_v56 = vmul.f32 0.5, %v1052_v16 }
 0x577   : > { %v1069_v18 = vmul.f32 0.70710677, %v1047_v15  ;;  %v1065_v4 = vmul.f32 0.5, %v1047_v15 }
 0x578   : > { %1683 = verf.f32 %v1070_v17  ;;  %v973_v7 = vpop.permute.xlu1 %972 }
 0x579   : > { %1685 = verf.f32 %v1069_v18  ;;  %v1057_v54 = vadd.f32 %v1056_v58, %v973_v7 }
 0x57b   : > { %v1071_v8 = vmul.f32 0.70710677, %v1057_v54  ;;  %v1067_v31 = vmul.f32 0.5, %v1057_v54 }
 0x57c   : > { %v978_v19 = vpop.permute.xlu1 %977 }
 0x57d   : > { %1687 = verf.f32 %v1071_v8  ;;  %v1062_v60 = vadd.f32 %v1543_v53, %v978_v19 }
 0x57f   : > { %v1072_v63 = vmul.f32 0.70710677, %v1062_v60  ;;  %v1068_v36 = vmul.f32 0.5, %v1062_v60 }
 0x581   : > { %1689 = verf.f32 %v1072_v63 }
 0x582   : > { %v1684_v6 = vpop.eup %1683 }
 0x583   : > { %v1686_v24 = vpop.eup %1685  ;;  %v1078_v12 = vadd.f32 1.0, %v1684_v6 }
 0x584   : > { %v1077_v25 = vadd.f32 1.0, %v1686_v24 }
 0x585   : > { %v2106_v11 = vmul.f32 %v1078_v12, %v1066_v56 }
 0x586   : > { %v2108_v29 = vmul.f32 %v1077_v25, %v1065_v4 }
 0x587   : > { %v1688_v30 = vpop.eup %1687  ;;  %v1093_v28 = vsel (!%p1447_p7), %vm1089_vm5, %v2106_v11, 0.0  ;;  %v1103_v41 = vmul.f32 (!%p1447_p7), %v2106_v11, %v2106_v11 }
 0x588   : > { %v1079_v33 = vadd.f32 1.0, %v1688_v30  ;;  %1088 = sbr.rel (%p1447_p7) target bundleno = 1576 (0x628), region = 60  ;;  %v1090_v40 = vsel (!%p1447_p7), %vm1089_vm5, %v2108_v29, 0.0  ;;  %v1102_v39 = vmul.f32 (!%p1447_p7), %v2108_v29, %v2108_v29 }
 0x589   : > { %1091 = vadd.xlane.f32.xlu0 (!%p1447_p7), %v1090_v40  ;;  %v1109_v42 = vsel (!%p1447_p7), %vm1089_vm5, %v1103_v41, 0.0 }
 0x58a   : > { %v2110_v34 = vmul.f32 %v1079_v33, %v1067_v31  ;;  %v1106_v47 = vsel (!%p1447_p7), %vm1089_vm5, %v1102_v39, 0.0 }
 0x58b   : > { %v1690_v35 = vpop.eup %1689 }
 0x58c   : > { %v1080_v37 = vadd.f32 1.0, %v1690_v35  ;;  %v1096_v38 = vsel (!%p1447_p7), %vm1089_vm5, %v2110_v34, 0.0  ;;  %v1104_v3 = vmul.f32 (!%p1447_p7), %v2110_v34, %v2110_v34 }
 0x58d   : > { %1097 = vadd.xlane.f32.xlu1 (!%p1447_p7), %v1096_v38  ;;  %1094 = vadd.xlane.f32.xlu0 (!%p1447_p7), %v1093_v28 }
 0x58e   : > { %v2112_v22 = vmul.f32 %v1080_v37, %v1068_v36  ;;  %v1112_v44 = vsel (!%p1447_p7), %vm1089_vm5, %v1104_v3, 0.0 }
 0x590   : > { %v1099_v32 = vsel %vm1089_vm5, %v2112_v22, 0.0  ;;  %v1105_v43 = vmul.f32 %v2112_v22, %v2112_v22 }
 0x591   : > { %1100 = vadd.xlane.f32.xlu1 %v1099_v32  ;;  %1107 = vadd.xlane.f32.xlu0 %v1106_v47 }
 0x592   : > { %v1115_v59 = vsel %vm1089_vm5, %v1105_v43, 0.0 }
 0x595   : > { %1110 = vadd.xlane.f32.xlu1 %v1109_v42  ;;  %1113 = vadd.xlane.f32.xlu0 %v1112_v44 }
 0x599   : > { %1116 = vadd.xlane.f32.xlu1 %v1115_v59 }
 0x616   : > { %v1092_v20 = vpop.xlane.xlu0 %1091 }
 0x617   : > { %1123 = vst.msk [vmem:[#allocation4] sm:$0xff] %vm1122_vm6, %v1092_v20 }
 0x61a   : > { %v1098_v46 = vpop.xlane.xlu1 %1097  ;;  %v1095_v5 = vpop.xlane.xlu0 %1094 }
 0x61b   : > { %1125 = vst.msk [vmem:[#allocation4 + $0x10] sm:$0xff] %vm1122_vm6, %v1098_v46  ;;  %1124 = vst.msk [vmem:[#allocation4 + $0x8] sm:$0xff] %vm1122_vm6, %v1095_v5 }
 0x61e   : > { %v1101_v62 = vpop.xlane.xlu1 %1100  ;;  %v1108_v26 = vpop.xlane.xlu0 %1107 }
 0x61f   : > { %1126 = vst.msk [vmem:[#allocation4 + $0x18] sm:$0xff] %vm1122_vm6, %v1101_v62  ;;  %1127 = vst.msk [vmem:[#allocation5] sm:$0xff] %vm1122_vm6, %v1108_v26 }
 0x622   : > { %v1111_v23 = vpop.xlane.xlu1 %1110  ;;  %v1114_v48 = vpop.xlane.xlu0 %1113 }
 0x623   : > { %1128 = vst.msk [vmem:[#allocation5 + $0x8] sm:$0xff] %vm1122_vm6, %v1111_v23  ;;  %1129 = vst.msk [vmem:[#allocation5 + $0x10] sm:$0xff] %vm1122_vm6, %v1114_v48 }
 0x626   : > { %v1117_v27 = vpop.xlane.xlu1 %1116 }
 0x627   : > { %1130 = vst.msk [vmem:[#allocation5 + $0x18] sm:$0xff] %vm1122_vm6, %v1117_v27 }
 0x628 PF: > { %p1448_p8 = scmp.ne.s32.totalorder %s1746_s15, 2 }
 0x629   : > { %v1164_v49 = vld [vmem:[#allocation4] sm:$0xff] (!%p1448_p8)  ;;  %v1166_v21 = vld [vmem:[#allocation4 + $0x10] sm:$0xff] (!%p1448_p8)  ;;  %v1165_v53 = vld [vmem:[#allocation4 + $0x8] sm:$0xff] (!%p1448_p8)  ;;  %s1765_s15 = smov (!%p1448_p8), 4   ;;  %s1766_s27 = smov (!%p1448_p8), 124   ;;  %v1768_v26 = vmov (!%p1448_p8), 6  }
 0x62a   : > { %1163 = sbr.rel (%p1448_p8) target bundleno = 2338 (0x922), region = 72  ;;  %v1168_v45 = vld [vmem:[#allocation5] sm:$0xff] (!%p1448_p8)  ;;  %v1172_v50 = vmul.f32 (!%p1448_p8), 0.125, %v1164_v49  ;;  %v1170_v51 = vld [vmem:[#allocation5 + $0x10] sm:$0xff] (!%p1448_p8)  ;;  %v1174_v52 = vmul.f32 (!%p1448_p8), 0.125, %v1166_v21  ;;  %v1169_v55 = vld [vmem:[#allocation5 + $0x8] sm:$0xff] (!%p1448_p8)  ;;  %1691 = vset.pattern.permute.xlu1 (!%p1448_p8), %v1768_v26  ;;  %1692 = vset.pattern.permute.xlu0 (!%p1448_p8), %v1768_v26 }
 0x62b   : > { %v1176_v57 = vmul.f32 (!%p1448_p8), 0.125, %v1168_v45  ;;  %v1178_v58 = vmul.f32 (!%p1448_p8), 0.125, %v1170_v51  ;;  %v1173_v61 = vmul.f32 (!%p1448_p8), 0.125, %v1165_v53  ;;  %v1177_v1 = vmul.f32 (!%p1448_p8), 0.125, %v1169_v55  ;;  %v1167_v16 = vld [vmem:[#allocation4 + $0x18] sm:$0xff] (!%p1448_p8)  ;;  %s1767_s28 = smov (!%p1448_p8), 5  }
 0x62c   : > { %v1180_v15 = vmul.f32 (!%p1448_p8), %v1172_v50, %v1172_v50  ;;  %v1182_v17 = vmul.f32 (!%p1448_p8), %v1174_v52, %v1174_v52  ;;  %v1175_v18 = vmul.f32 (!%p1448_p8), 0.125, %v1167_v16  ;;  %s1769_s29 = smov (!%p1448_p8), 1   ;;  %s1770_s30 = smov (!%p1448_p8), 2   ;;  %vm1296_vm7 = vcmask (!%p1448_p8), 56368  }
 0x62d   : > { %v1181_v54 = vmul.f32 (!%p1448_p8), %v1173_v61, %v1173_v61  ;;  %vm1339_vm8 = vcmask (!%p1448_p8), 64512   ;;  %vm1359_vm9 = vcmask (!%p1448_p8), 57344  }
 0x62e   : > { %v1171_v2 = vld [vmem:[#allocation5 + $0x18] sm:$0xff] (!%p1448_p8)  ;;  %v1184_v8 = vsub.f32 (!%p1448_p8), %v1176_v57, %v1180_v15  ;;  %v1186_v19 = vsub.f32 (!%p1448_p8), %v1178_v58, %v1182_v17  ;;  %v1183_v60 = vmul.f32 (!%p1448_p8), %v1175_v18, %v1175_v18 }
 0x62f   : > { %v1179_v7 = vmul.f32 (!%p1448_p8), 0.125, %v1171_v2  ;;  %v1185_v63 = vsub.f32 (!%p1448_p8), %v1177_v1, %v1181_v54 }
 0x630   : > { %v1188_v6 = vmax.f32 (!%p1448_p8), %v1184_v8, 0.0  ;;  %v1190_v24 = vmax.f32 (!%p1448_p8), %v1186_v19, 0.0 }
 0x631   : > { %v1187_v56 = vsub.f32 %v1179_v7, %v1183_v60  ;;  %v1189_v12 = vmax.f32 %v1185_v63, 0.0 }
 0x632   : > { %v1192_v4 = vadd.f32 1e-05, %v1188_v6  ;;  %v1194_v25 = vadd.f32 1e-05, %v1190_v24 }
 0x633   : > { %v1191_v30 = vmax.f32 %v1187_v56, 0.0  ;;  %v1193_v31 = vadd.f32 1e-05, %v1189_v12 }
 0x634   : > { %1694 = vrsqrt.f32 %v1192_v4 }
 0x635   : > { %v1195_v33 = vadd.f32 1e-05, %v1191_v30  ;;  %1696 = vrsqrt.f32 %v1194_v25 }
 0x636   : > { %1698 = vrsqrt.f32 %v1193_v31 }
 0x637   : > { %1700 = vrsqrt.f32 %v1195_v33 }
 0x63e   : > { %v1695_v35 = vpop.eup %1694 }
 0x63f   : > { %v1697_v36 = vpop.eup %1696  ;;  %1204 = vrot.lane.b32.xlu0 %v1695_v35, %s1765_s15 }
 0x640   : > { %v1699_v37 = vpop.eup %1698  ;;  %1208 = vrot.lane.b32.xlu1 %v1697_v36, %s1765_s15 }
 0x641   : > { %v1701_v38 = vpop.eup %1700 }
 0x643   : > { %1206 = vrot.lane.b32.xlu0 %v1699_v37, %s1765_s15  ;;  %v1771_v37 = vmov 7  }
 0x644   : > { %1210 = vrot.lane.b32.xlu1 %v1701_v38, %s1765_s15 }
 0x6b1   : > { %v1205_v40 = vpop.permute.xlu0 %1204 }
 0x6b2   : > { %v1216_v32 = vmul.f32 %v1205_v40, %v1859_v10  ;;  %v1209_v28 = vpop.permute.xlu1 %1208 }
 0x6b3   : > { %v1218_v41 = vmul.f32 %v1209_v28, %v1854_v9 }
 0x6b4   : > { %1224 = vrot.lane.b32.xlu0 %v1216_v32, %s1766_s27 }
 0x6b5   : > { %v1207_v39 = vpop.permute.xlu0 %1206 }
 0x6b6   : > { %v1217_v42 = vmul.f32 %v1207_v39, %v1881_v14  ;;  %v1211_v47 = vpop.permute.xlu1 %1210 }
 0x6b7   : > { %v1219_v43 = vmul.f32 %v1211_v47, %v1876_v13 }
 0x6b8   : > { %1228 = vrot.lane.b32.xlu0 %v1218_v41, %s1766_s27  ;;  %1226 = vrot.lane.b32.xlu1 %v1217_v42, %s1766_s27 }
 0x6bc   : > { %1230 = vrot.lane.b32.xlu1 %v1219_v43, %s1766_s27 }
 0x726   : > { %v1225_v3 = vpop.permute.xlu0 %1224 }
 0x727   : > { %v1236_v59 = vmul.f32 %v1225_v3, %v1172_v50 }
 0x729   : > { %1244 = vrot.lane.b32.xlu0 %v1236_v59, %s1767_s28 }
 0x72a   : > { %v1227_v44 = vpop.permute.xlu1 %1226  ;;  %v1229_v46 = vpop.permute.xlu0 %1228 }
 0x72b   : > { %v1237_v20 = vmul.f32 %v1227_v44, %v1173_v61  ;;  %v1238_v62 = vmul.f32 %v1229_v46, %v1174_v52 }
 0x72d   : > { %1246 = vrot.lane.b32.xlu1 %v1237_v20, %s1767_s28  ;;  %1248 = vrot.lane.b32.xlu0 %v1238_v62, %s1767_s28 }
 0x72e   : > { %v1231_v5 = vpop.permute.xlu1 %1230 }
 0x72f   : > { %v1239_v23 = vmul.f32 %v1231_v5, %v1175_v18 }
 0x731   : > { %1250 = vrot.lane.b32.xlu1 %v1239_v23, %s1767_s28 }
 0x79b   : > { %v1245_v27 = vpop.permute.xlu0 %1244 }
 0x79c   : > { %v1256_v48 = vsub.f32 %v1859_v10, %v1245_v27 }
 0x79e   : > { %1280 = vrot.lane.b32.xlu0 %v1256_v48, %s1769_s29 }
 0x79f   : > { %v1247_v49 = vpop.permute.xlu1 %1246  ;;  %v1249_v45 = vpop.permute.xlu0 %1248 }
 0x7a0   : > { %v1257_v21 = vsub.f32 %v1881_v14, %v1247_v49  ;;  %v1258_v50 = vsub.f32 %v1854_v9, %v1249_v45 }
 0x7a2   : > { %1282 = vrot.lane.b32.xlu1 %v1257_v21, %s1769_s29  ;;  %1284 = vrot.lane.b32.xlu0 %v1258_v50, %s1769_s29 }
 0x7a3   : > { %v1251_v57 = vpop.permute.xlu1 %1250 }
 0x7a4   : > { %v1259_v51 = vsub.f32 %v1876_v13, %v1251_v57 }
 0x7a6   : > { %1286 = vrot.lane.b32.xlu1 %v1259_v51, %s1769_s29  ;;  %1260 = vrot.lane.b32.xlu0 %v1216_v32, %s1770_s30 }
 0x7aa   : > { %1262 = vrot.lane.b32.xlu1 %v1217_v42, %s1770_s30  ;;  %1264 = vrot.lane.b32.xlu0 %v1218_v41, %s1770_s30 }
 0x7ae   : > { %1266 = vrot.lane.b32.xlu1 %v1219_v43, %s1770_s30 }
 0x810   : > { %v1281_v52 = vpop.permute.xlu0 %1280 }
 0x811   : > { %v1292_v53 = vmul.f32 %v1281_v52, %v1859_v10 }
 0x813   : > { %v1297_v16 = vsel %vm1296_vm7, %v1292_v53, 0.0 }
 0x814   : > { %v1283_v55 = vpop.permute.xlu1 %1282  ;;  %v1285_v58 = vpop.permute.xlu0 %1284 }
 0x815   : > { %v1293_v61 = vmul.f32 %v1283_v55, %v1881_v14  ;;  %v1294_v1 = vmul.f32 %v1285_v58, %v1854_v9 }
 0x817   : > { %v1298_v2 = vsel %vm1296_vm7, %v1293_v61, 0.0  ;;  %v1300_v7 = vsel %vm1296_vm7, %v1294_v1, 0.0 }
 0x818   : > { %v1299_v15 = vadd.f32 %v1298_v2, %v1297_v16  ;;  %v1287_v17 = vpop.permute.xlu1 %1286  ;;  %v1261_v18 = vpop.permute.xlu0 %1260 }
 0x819   : > { %v1295_v54 = vmul.f32 %v1287_v17, %v1876_v13  ;;  %v1272_v8 = vmul.f32 %v1261_v18, %v1859_v10 }
 0x81a   : > { %v1301_v19 = vadd.f32 %v1300_v7, %v1299_v15 }
 0x81b   : > { %v1302_v60 = vsel %vm1296_vm7, %v1295_v54, 0.0  ;;  %1317 = vperm.xlu1 %1691, %v1272_v8  }
 0x81c   : > { %v1303_v63 = vadd.f32 %v1302_v60, %v1301_v19  ;;  %v1263_v6 = vpop.permute.xlu1 %1262  ;;  %v1265_v24 = vpop.permute.xlu0 %1264 }
 0x81d   : > { %v1274_v56 = vmul.f32 %v1265_v24, %v1854_v9  ;;  %v1273_v10 = vmul.f32 %v1263_v6, %v1881_v14 }
 0x81e   : > { %v1304_v12 = vrot.slane %v1303_v63, 4 }
 0x81f   : > { %1327 = vperm.xlu1 %1691, %v1274_v56  }
 0x820   : > { %v1305_v4 = vadd.f32 %v1304_v12, %v1303_v63  ;;  %v1267_v25 = vpop.permute.xlu1 %1266 }
 0x821   : > { %v1275_v30 = vmul.f32 %v1267_v25, %v1876_v13 }
 0x822   : > { %v1306_v31 = vrot.slane %v1305_v4, 2 }
 0x823   : > { %1332 = vperm.xlu1 %1691, %v1275_v30  }
 0x824   : > { %v1307_v33 = vadd.f32 %v1306_v31, %v1305_v4 }
 0x826   : > { %v1308_v35 = vrot.slane %v1307_v33, 1 }
 0x828   : > { %v1309_v36 = vadd.f32 %v1308_v35, %v1307_v33 }
 0x82a   : > { %1311 = vrot.lane.b32.xlu0 %v1309_v36, %s1769_s29 }
 0x82e   : > { %1322 = vperm.xlu0 %1692, %v1273_v10  }
 0x832   : > { %1693 = vset.pattern.permute.xlu0 %v1771_v37 }
 0x89a   : > { %v1318_v40 = vpop.permute.xlu1 %1317 }
 0x89b   : > { %v1335_v41 = vmul.f32 %v1318_v40, %v2108_v29 }
 0x89c   : > { %v1312_v38 = vpop.permute.xlu0 %1311 }
 0x89d   : > { %v1314_v9 = vadd.f32 %v1312_v38, %v1822_v0  ;;  %v1340_v42 = vsel %vm1339_vm8, %v1335_v41, 0.0 }
 0x89e   : > { %v1328_v28 = vpop.permute.xlu1 %1327 }
 0x89f   : > { %1355 = vperm.xlu0 %1693, %v1314_v9   ;;  %v1337_v47 = vmul.f32 %v1328_v28, %v2110_v34 }
 0x8a1   : > { %v1343_v3 = vsel %vm1339_vm8, %v1337_v47, 0.0 }
 0x8a2   : > { %v1333_v14 = vpop.permute.xlu1 %1332 }
 0x8a3   : > { %v1338_v59 = vmul.f32 %v1333_v14, %v2112_v22 }
 0x8a5   : > { %v1345_v0 = vsel %vm1339_vm8, %v1338_v59, 0.0 }
 0x8ad   : > { %v1323_v32 = vpop.permute.xlu0 %1322 }
 0x8ae   : > { %v1336_v13 = vmul.f32 %v1323_v32, %v2106_v11 }
 0x8b0   : > { %v1341_v39 = vsel %vm1339_vm8, %v1336_v13, 0.0 }
 0x8b1   : > { %v1342_v43 = vadd.f32 %v1341_v39, %v1340_v42 }
 0x8b3   : > { %v1344_v44 = vadd.f32 %v1343_v3, %v1342_v43 }
 0x8b5   : > { %v1346_v46 = vadd.f32 %v1345_v0, %v1344_v44 }
 0x8b7   : > { %v1347_v20 = vrot.slane %v1346_v46, 4 }
 0x8b9   : > { %v1348_v62 = vadd.f32 %v1347_v20, %v1346_v46 }
 0x8bb   : > { %v1349_v5 = vrot.slane %v1348_v62, 2 }
 0x8bd   : > { %v1350_v11 = vadd.f32 %v1349_v5, %v1348_v62 }
 0x8bf   : > { %v1351_v23 = vrot.slane %v1350_v11, 1 }
 0x8c1   : > { %v1352_v26 = vadd.f32 %v1351_v23, %v1350_v11 }
 0x91e   : > { %v1356_v29 = vpop.permute.xlu0 %1355 }
 0x91f   : > { %v1358_v27 = vadd.f32 %v1356_v29, %v1352_v26 }
 0x921   : > { %1360 = vst.msk [vmem:[#allocation6] sm:$0x1] %vm1359_vm9, %v1358_v27 }
 0x922 PF: > { %p2172_p9 = scmp.eq.s32.totalorder %s1423_s18, 2  ;;  %s1772_s6 = smov [#allocation6]  }
 0x923   : > { %s1370_s7 = sshll.u32 %s1772_s6, 4  ;;  %s1371_s7 = int_to_ptr.vmem [resolvable:$true] %s1370_s7 }
 0x924   : > { %s1702_s8 = scalar_lea.vmem %s1371_s7, 16  ;;  %s1708_s9 = scalar_lea.vmem %s1371_s7, 32 }
 0x925   : > { %p1703_p10 = scmp.ne.s32.totalorder %s1371_s7, %s1702_s8  ;;  %p1709_p13 = scmp.lt.s32.totalorder %s1371_s7, %s1371_s7 }
 0x926   : > { %p1710_p0 = scmp.lt.s32.totalorder %s1708_s9, %s1702_s8 }
 0x927   : > { %p1704_p11 = pnand %p1703_p10, %p2172_p9 }
 0x928   : > { %p1711_p1 = por %p1710_p0, %p1709_p13 }
 0x929   : > { %p1705_p12 = pneg %p1704_p11 }
 0x92b   : > { %p1712_p2 = pnand %p1711_p1, %p1705_p12 }
 0x92d   : > { %1715 = shalt.err (!%p1712_p2)
}
 0x92e   : > { %s1716_s11 = scalar_lea.hbm %s2211_s4, 16 }
 0x92f   : > { %p1717_p3 = scmp.ne.s32.totalorder %s2211_s4, %s1716_s11  ;;  %p1722_p6 = scmp.lt.u32.totalorder %s1716_s11, %s2211_s4 }
 0x931   : > { %p1718_p4 = pnand %p1717_p3, %p2172_p9 }
 0x933   : > { %p1719_p5 = pneg %p1718_p4 }
 0x935   : > { %p1724_p7 = pnand %p1722_p6, %p1719_p5 }
 0x937   : > { %1727 = shalt.err (!%p1724_p7)
}
 0x938   : > { %1579 = dma.vmem_to_hbm [thread:$0]  (%p2172_p9), %s1371_s7, 16, %s2211_s4, [#allocation7]  }
 0x939   : > { %1741 = dma.done.wait (%p2172_p9), [#allocation7], 16  }
 0x93a   : > { %1743 = vsyncadd (%p2172_p9), [#allocation7], 4294967280 }
 0x93b PF: > { %s15_s17 = sadd.s32 1, %s1754_s17   ;;  %s2213_s15 = smov %s1750_s16 }
 0x93c   : > { %p12_p8 = scmp.ge.s32.totalorder %s15_s17, 5   ;;  %s2214_s16 = smov %s2216_s19 }
 0x93e   :  { %14 = sbr.rel (!%p12_p8) target bundleno = 2 (0x2), region = 100 }
 0x945   :  { %1383 = vsyncpa [#allocation7], 1 }
 0x946   :  { %1385 = vsyncpa [#allocation7 + $0x1], 1 }

</bundles_post_ra>
